<compile_context>
chip_gen: v7x
topology: tpu7x:2x2x1
jax: 0.10.0
libtpu: 0.0.40
codegen_flags: <defaults>
</compile_context>

<pallas_src>
import functools

import jax
import jax.numpy as jnp
from jax.experimental import pallas as pl
from jax.experimental.pallas import tpu as pltpu

_LANE = 128


def _round_up(x, m):
    return ((x + m - 1) // m) * m


def _round_down(x, m):
    return (x // m) * m


def _choose_tiles(num_nodes, tm_req, tk_req):
    """Tile sizes for the aggregation kernels.

    tk is a multiple of tm, so n_pad = round_up(n, tk) and padding stays bounded.
    When possible the row grid keeps >= 2 programs (v7x has 2 TensorCores/chip).
    """
    n128 = _round_up(num_nodes, _LANE)
    tm = max(_LANE, _round_down(min(tm_req, n128), _LANE))
    if n128 >= 2 * _LANE and tm > n128 // 2:
        tm = max(_LANE, _round_down(n128 // 2, _LANE))
    tk_cap = _round_up(n128, tm)
    tk = max(tm, _round_down(min(tk_req, tk_cap), tm))
    n_pad = _round_up(num_nodes, tk)  # tk % tm == 0  ->  n_pad % tm == 0
    return tm, tk, n_pad


def _pad2(x, rows, cols):
    return jnp.pad(x, ((0, rows - x.shape[0]), (0, cols - x.shape[1])))


# --------------------------- feature-transform kernel (X @ W1) ---------------------------
def _transform_kernel(x_ref, w_ref, o_ref):
    # o = x @ w  (bf16 inputs, f32 MXU accumulation, bf16 output for the next bf16 matmul)
    o_ref[...] = jnp.dot(
        x_ref[...], w_ref[...], preferred_element_type=jnp.float32
    ).astype(o_ref.dtype)


def _transform(x, w, *, tm):
    n, f = x.shape
    h = w.shape[1]
    est = 2 * tm * f * 2 + 2 * f * h * 2 + 2 * tm * h * 2
    ckw = dict(dimension_semantics=("parallel",))
    if est > (12 << 20):  # v5e default scoped VMEM is 16 MiB
        ckw["vmem_limit_bytes"] = int(min(2 * est, 48 << 20))
    return pl.pallas_call(
        _transform_kernel,
        out_shape=jax.ShapeDtypeStruct((n, h), jnp.bfloat16),
        grid_spec=pltpu.PrefetchScalarGridSpec(
            num_scalar_prefetch=0,
            grid=(n // tm,),
            in_specs=[
                pl.BlockSpec((tm, f), lambda i: (i, 0)),
                pl.BlockSpec((f, h), lambda i: (0, 0)),
            ],
            out_specs=pl.BlockSpec((tm, h), lambda i: (i, 0)),
        ),
        compiler_params=pltpu.CompilerParams(**ckw),
    )(x, w)


# --------------- aggregation kernel (A_hat @ M, f32 accumulator, fused epilogue) ---------
def _make_agg_kernel(epilogue, n_extra, m_resident, tk):
    def kernel(*refs):
        a_ref = refs[0]
        m_ref = refs[1]
        extra = refs[2:2 + n_extra]
        o_ref = refs[2 + n_extra]
        acc_ref = refs[3 + n_extra]

        k = pl.program_id(1)

        @pl.when(k == 0)
        def _():
            acc_ref[...] = jnp.zeros_like(acc_ref)

        if m_resident:
            # M slab is fully VMEM-resident; slice the (tk, h) panel for this reduction step.
            off = pl.multiple_of(k * tk, tk)
            m_tile = m_ref[pl.ds(off, tk), :]
        else:
            m_tile = m_ref[...]

        acc_ref[...] += jnp.dot(a_ref[...], m_tile, preferred_element_type=jnp.float32)

        @pl.when(k == pl.num_programs(1) - 1)
        def _():
            o_ref[...] = epilogue(acc_ref[...], extra).astype(o_ref.dtype)

    return kernel


def _aggregate(a_hat, m, extras, *, epilogue, out_dtype, out_cols, tm, tk,
               m_resident, vmem_limit_bytes=None):
    n_pad = a_hat.shape[0]
    h = m.shape[1]

    if m_resident:
        m_spec = pl.BlockSpec((n_pad, h), lambda i, k: (0, 0))  # fetched once, kept resident
    else:
        m_spec = pl.BlockSpec((tk, h), lambda i, k: (k, 0))     # streamed fallback

    extra_specs = [pl.BlockSpec(e.shape, lambda i, k: (0, 0)) for e in extras]

    ckw = dict(dimension_semantics=("parallel", "arbitrary"))
    if vmem_limit_bytes is not None:
        ckw["vmem_limit_bytes"] = vmem_limit_bytes

    # TODO(synk): pipeline_mode=pl.Buffered(3) on the A_hat stream (few-% win) not enabled.
    return pl.pallas_call(
        _make_agg_kernel(epilogue, len(extras), m_resident, tk),
        out_shape=jax.ShapeDtypeStruct((n_pad, out_cols), out_dtype),
        grid_spec=pltpu.PrefetchScalarGridSpec(
            num_scalar_prefetch=0,
            grid=(n_pad // tm, n_pad // tk),  # rows parallel, reduction axis last
            in_specs=[pl.BlockSpec((tm, tk), lambda i, k: (i, k)), m_spec, *extra_specs],
            out_specs=pl.BlockSpec((tm, out_cols), lambda i, k: (i, 0)),
            scratch_shapes=[pltpu.VMEM((tm, h), jnp.float32)],  # resident f32 accumulator
        ),
        compiler_params=pltpu.CompilerParams(**ckw),
    )(a_hat, m, *extras)


# ------------------------------------- JAX glue ------------------------------------------
def build_norm_adj(edge_index, num_nodes):
    """Dense D^{-1/2}(A+I)D^{-1/2} matching PyG's gcn_norm (add_self_loops=True)."""
    src = edge_index[0]
    dst = edge_index[1]
    loop = jnp.arange(num_nodes, dtype=src.dtype)
    src = jnp.concatenate([src, loop])
    dst = jnp.concatenate([dst, loop])
    w = jnp.ones(src.shape[0], jnp.float32)
    deg = jnp.zeros(num_nodes, jnp.float32).at[dst].add(w)
    dinv = jnp.where(deg > 0, 1.0 / jnp.sqrt(deg), 0.0)
    norm = dinv[src] * dinv[dst] * w
    # out[i] aggregates messages from sources j of edges (j -> i): A_hat[i, j]
    return jnp.zeros((num_nodes, num_nodes), jnp.float32).at[dst, src].add(norm)


def prepare_adjacency(edge_index, num_nodes, *, tm=512, tk=2048):
    """Build the padded bf16 A_hat ONCE (hoisted out of the forward path) and pick tiles."""
    tm, tk, n_pad = _choose_tiles(num_nodes, tm, tk)
    a_hat = build_norm_adj(edge_index, num_nodes)
    a_p = _pad2(a_hat, n_pad, n_pad).astype(jnp.bfloat16)
    # TODO(synk): int8 (v5e/v6e) / fp8-e4m3 (v7x) storage of A_hat would halve the dominant
    # HBM stream again but needs accuracy re-validation before shipping; bf16 kept for now.
    return a_p, (tm, tk, n_pad)


def gcn_forward(x, a_p, w1, b1, w2, b2, *, tm, tk):
    """Eval-mode GCN forward given the prebuilt padded bf16 A_hat."""
    n_pad = a_p.shape[0]
    n, f_in = x.shape
    hidden = w1.shape[1]
    num_classes = w2.shape[1]

    f_pad = _round_up(f_in, _LANE)
    h_pad = _round_up(hidden, _LANE)
    c_pad = _round_up(num_classes, _LANE)

    x_p = _pad2(x, n_pad, f_pad).astype(jnp.bfloat16)
    w1_p = _pad2(w1, f_pad, h_pad).astype(jnp.bfloat16)
    w2_p = _pad2(w2, h_pad, c_pad).astype(jnp.bfloat16)
    b1_p = _pad2(b1.reshape(1, -1), 1, h_pad).astype(jnp.float32)
    b2_p = _pad2(b2.reshape(1, -1), 1, c_pad).astype(jnp.float32)

    # VMEM budgeting (conservative, counts double buffers): keep the XW / HW slab resident
    # when it fits; set vmem_limit_bytes only when the footprint exceeds v5e's 16 MiB default,
    # and never ask for more than fits v7x's 64 MiB physical VMEM.
    slab_bytes = 2 * n_pad * max(h_pad, c_pad) * 2
    a_tiles_bytes = 2 * tm * tk * 2
    fixed_bytes = (2 * tm * c_pad * 4 + tm * max(h_pad, c_pad) * 4
                   + 2 * h_pad * c_pad * 2 + 2 * (h_pad + c_pad) * 4)
    m_resident = (slab_bytes + a_tiles_bytes + fixed_bytes) <= (28 << 20)
    est_bytes = a_tiles_bytes + fixed_bytes + (slab_bytes if m_resident else 2 * tk * h_pad * 2)
    vmem_limit = int(min(2 * est_bytes, 48 << 20)) if est_bytes > (12 << 20) else None

    # layer 1 feature transform: XW1 = X @ W1 (computed once, row-tiled)
    xw = _transform(x_p, w1_p, tm=tm)

    # layer 1 aggregation with fused bias + ReLU + (H @ W2) epilogue:
    #   HW2 = relu(A_hat @ XW1 + b1) @ W2
    # (dropout is identity in eval mode)
    # TODO(synk): training-mode dropout (pltpu.prng_seed/prng_random_bits) not implemented.
    def epi1(acc, extras):
        b1_ref, w2_ref = extras
        h = jnp.maximum(acc + b1_ref[...], 0.0)
        return jnp.dot(h.astype(jnp.bfloat16), w2_ref[...],
                       preferred_element_type=jnp.float32)

    hw = _aggregate(a_p, xw, (b1_p, w2_p), epilogue=epi1, out_dtype=jnp.bfloat16,
                    out_cols=c_pad, tm=tm, tk=tk, m_resident=m_resident,
                    vmem_limit_bytes=vmem_limit)

    # layer 2 aggregation with fused bias + masked log_softmax epilogue:
    #   out = log_softmax(A_hat @ HW2 + b2)
    def epi2(acc, extras):
        (b2_ref,) = extras
        z = acc + b2_ref[...]
        col = jax.lax.broadcasted_iota(jnp.int32, z.shape, 1)
        valid = col < num_classes
        m = jnp.max(jnp.where(valid, z, -jnp.inf), axis=1, keepdims=True)
        e = jnp.where(valid, jnp.exp(z - m), 0.0)
        lse = jnp.log(jnp.sum(e, axis=1, keepdims=True)) + m
        return z - lse

    out = _aggregate(a_p, hw, (b2_p,), epilogue=epi2, out_dtype=jnp.float32,
                     out_cols=c_pad, tm=tm, tk=tk, m_resident=m_resident,
                     vmem_limit_bytes=vmem_limit)

    # TODO(synk): block-sparse / gather A_hat formulation for very large sparse graphs.
    return out[:n, :num_classes]


if __name__ == "__main__":
    key = jax.random.PRNGKey(0)

    # small shapes consistent with the module
    num_nodes = 200
    num_edges = 800
    input_dim, hidden_dim, output_dim = 16, 32, 8
    dropout = 0.5  # unused in eval mode

    k_x, k_e1, k_e2, k_w1, k_w2, k_b1, k_b2 = jax.random.split(key, 7)

    x = jax.random.normal(k_x, (num_nodes, input_dim), dtype=jnp.float32)
    edge_index = jnp.stack(
        [
            jax.random.randint(k_e1, (num_edges,), 0, num_nodes),
            jax.random.randint(k_e2, (num_edges,), 0, num_nodes),
        ],
        axis=0,
    ).astype(jnp.int32)

    # deterministic parameter init (Glorot-uniform-like weights, small biases)
    lim1 = (6.0 / (input_dim + hidden_dim)) ** 0.5
    lim2 = (6.0 / (hidden_dim + output_dim)) ** 0.5
    w1 = jax.random.uniform(k_w1, (input_dim, hidden_dim), jnp.float32, -lim1, lim1)
    b1 = 0.1 * jax.random.normal(k_b1, (1, hidden_dim), jnp.float32)
    w2 = jax.random.uniform(k_w2, (hidden_dim, output_dim), jnp.float32, -lim2, lim2)
    b2 = 0.1 * jax.random.normal(k_b2, (1, output_dim), jnp.float32)

    # A_hat prepared once (hoisted out of the forward path) and reused across forwards.
    a_p, (tm, tk, n_pad) = prepare_adjacency(edge_index, num_nodes)

    fwd = jax.jit(functools.partial(gcn_forward, tm=tm, tk=tk))
    out = fwd(x, a_p, w1, b1, w2, b2)
    out = jax.block_until_ready(out)

    # sanity 1: shape + log_softmax rows exponentiate-sum to 1
    assert out.shape == (num_nodes, output_dim)
    row_sums = jnp.exp(out).sum(axis=1)
    assert bool(jnp.allclose(row_sums, 1.0, atol=1e-3))

    # sanity 2: matches a plain-JAX f32 reference (loose tol for the bf16 A_hat/feature stream)
    a_ref = build_norm_adj(edge_index, num_nodes)
    h_ref = jnp.maximum(a_ref @ (x @ w1) + b1, 0.0)
    z_ref = a_ref @ (h_ref @ w2) + b2
    ref = jax.nn.log_softmax(z_ref, axis=1)
    assert bool(jnp.allclose(out, ref, atol=0.15))

    print("KERNEL_OK")
</pallas_src>

<mosaic_0001>
module attributes {stable_mosaic.version = 11 : i64} {
  func.func @kernel(%arg0: i32, %arg1: i32, %arg2: memref<128x256xbf16, #tpu.memory_space<vmem>>, %arg3: memref<256x128xbf16, #tpu.memory_space<vmem>>, %arg4: memref<1x128xf32, #tpu.memory_space<vmem>>, %arg5: memref<128x128xf32, #tpu.memory_space<vmem>>, %arg6: memref<128x128xf32, #tpu.memory_space<vmem>>) attributes {dimension_semantics = [#tpu.dimension_semantics<parallel>, #tpu.dimension_semantics<arbitrary>], iteration_bounds = array<i64: 2, 1>, scalar_prefetch = 0 : i64, scratch_operands = 1 : i64, tpu.core_type = #tpu.core_type<tc>, window_params = [{transform_indices = @transform_0, window_bounds = array<i64: 128, 256>}, {pipeline_mode = #tpu.pipeline_mode<synchronous>, transform_indices = @transform_1, window_bounds = array<i64: 256, 128>}, {pipeline_mode = #tpu.pipeline_mode<synchronous>, transform_indices = @transform_2, window_bounds = array<i64: 1, 128>}, {transform_indices = @transform_3, window_bounds = array<i64: 128, 128>}]} {
    %c0_i32 = arith.constant 0 : i32
    %0 = arith.cmpi eq, %arg1, %c0_i32 : i32
    %1 = arith.extui %0 : i1 to i32
    %c0_i32_0 = arith.constant 0 : i32
    %2 = arith.cmpi ne, %1, %c0_i32_0 : i32
    scf.if %2 {
      %cst_9 = arith.constant 0.000000e+00 : f32
      %15 = vector.broadcast %cst_9 : f32 to vector<128x128xf32>
      %c0_10 = arith.constant 0 : index
      %c0_11 = arith.constant 0 : index
      %16 = vector.load %arg6[%c0_10, %c0_11] : memref<128x128xf32, #tpu.memory_space<vmem>>, vector<128x128xf32>
      tpu.vector_store %arg6[%c0_10, %c0_11], %15 {strides = array<i32>} : memref<128x128xf32, #tpu.memory_space<vmem>>, vector<128x128xf32>,
    } else {
    }
    %c256_i32 = arith.constant 256 : i32
    %3 = arith.muli %arg1, %c256_i32 : i32
    %4 = tpu.assume_multiple %3, 256 : i32
    %5 = arith.index_cast %4 : i32 to index
    %c0 = arith.constant 0 : index
    %6 = vector.load %arg3[%5, %c0] : memref<256x128xbf16, #tpu.memory_space<vmem>>, vector<256x128xbf16>
    %c0_1 = arith.constant 0 : index
    %c0_2 = arith.constant 0 : index
    %7 = vector.load %arg6[%c0_1, %c0_2] : memref<128x128xf32, #tpu.memory_space<vmem>>, vector<128x128xf32>
    %c0_3 = arith.constant 0 : index
    %c0_4 = arith.constant 0 : index
    %8 = vector.load %arg2[%c0_3, %c0_4] : memref<128x256xbf16, #tpu.memory_space<vmem>>, vector<128x256xbf16>
    %cst = arith.constant dense<0.000000e+00> : vector<128x128xf32>
    %9 = tpu.matmul %8, %6, %cst {dimension_numbers = #tpu.dot_dimension_numbers<[1], [0], [0], [1], [0, 0, 1, 1], [], []>} : vector<128x256xbf16>, vector<256x128xbf16>, vector<128x128xf32> -> vector<128x128xf32>
    %10 = arith.addf %7, %9 : vector<128x128xf32>
    %c0_5 = arith.constant 0 : index
    %c0_6 = arith.constant 0 : index
    %11 = vector.load %arg6[%c0_5, %c0_6] : memref<128x128xf32, #tpu.memory_space<vmem>>, vector<128x128xf32>
    tpu.vector_store %arg6[%c0_5, %c0_6], %10 {strides = array<i32>} : memref<128x128xf32, #tpu.memory_space<vmem>>, vector<128x128xf32>,
    %c0_i32_7 = arith.constant 0 : i32
    %12 = arith.cmpi eq, %arg1, %c0_i32_7 : i32
    %13 = arith.extui %12 : i1 to i32
    %c0_i32_8 = arith.constant 0 : i32
    %14 = arith.cmpi ne, %13, %c0_i32_8 : i32
    scf.if %14 {
      %c0_9 = arith.constant 0 : index
      %c0_10 = arith.constant 0 : index
      %15 = vector.load %arg6[%c0_9, %c0_10] : memref<128x128xf32, #tpu.memory_space<vmem>>, vector<128x128xf32>
      %c0_11 = arith.constant 0 : index
      %c0_12 = arith.constant 0 : index
      %16 = vector.load %arg4[%c0_11, %c0_12] : memref<1x128xf32, #tpu.memory_space<vmem>>, vector<1x128xf32>
      %17 = vector.broadcast %16 : vector<1x128xf32> to vector<128x128xf32>
      %18 = arith.addf %15, %17 : vector<128x128xf32>
      %19 = tpu.iota {dimensions = array<i32: 1>} : vector<128x128xi32>
      %c8_i32 = arith.constant 8 : i32
      %20 = vector.broadcast %c8_i32 : i32 to vector<128x128xi32>
      %21 = arith.cmpi slt, %19, %20 : vector<128x128xi32>
      %cst_13 = arith.constant 0xFF800000 : f32
      %22 = vector.broadcast %cst_13 : f32 to vector<128x128xf32>
      %23 = arith.select %21, %18, %22 : vector<128x128xi1>, vector<128x128xf32>
      %cst_14 = arith.constant dense<0xFF800000> : vector<128xf32>
      %24 = vector.multi_reduction <maximumf>, %23, %cst_14 [1] : vector<128x128xf32> to vector<128xf32>
      %25 = vector.shape_cast %24 : vector<128xf32> to vector<128x1xf32>
      %26 = vector.broadcast %25 : vector<128x1xf32> to vector<128x128xf32>
      %27 = arith.subf %18, %26 : vector<128x128xf32>
      %28 = math.exp %27 : vector<128x128xf32>
      %cst_15 = arith.constant 0.000000e+00 : f32
      %29 = vector.broadcast %cst_15 : f32 to vector<128x128xf32>
      %30 = arith.select %21, %28, %29 : vector<128x128xi1>, vector<128x128xf32>
      %cst_16 = arith.constant dense<0.000000e+00> : vector<128xf32>
      %31 = vector.multi_reduction <add>, %30, %cst_16 [1] : vector<128x128xf32> to vector<128xf32>
      %32 = vector.shape_cast %31 : vector<128xf32> to vector<128x1xf32>
      %33 = math.log %32 : vector<128x1xf32>
      %34 = arith.addf %33, %25 : vector<128x1xf32>
      %35 = vector.broadcast %34 : vector<128x1xf32> to vector<128x128xf32>
      %36 = arith.subf %18, %35 : vector<128x128xf32>
      %c0_17 = arith.constant 0 : index
      %c0_18 = arith.constant 0 : index
      %37 = vector.load %arg5[%c0_17, %c0_18] : memref<128x128xf32, #tpu.memory_space<vmem>>, vector<128x128xf32>
      tpu.vector_store %arg5[%c0_17, %c0_18], %36 {strides = array<i32>} : memref<128x128xf32, #tpu.memory_space<vmem>>, vector<128x128xf32>,
    } else {
    }
    return
  }
  func.func @transform_0(%arg0: i32, %arg1: i32) -> (i32, i32) {
    %c0_i32 = arith.constant 0 : i32
    return %arg0, %arg1 : i32, i32
  }
  func.func @transform_1(%arg0: i32, %arg1: i32) -> (i32, i32) {
    %c0_i32 = arith.constant 0 : i32
    %c0_i32_0 = arith.constant 0 : i32
    %c0_i32_1 = arith.constant 0 : i32
    return %c0_i32, %c0_i32_0 : i32, i32
  }
  func.func @transform_2(%arg0: i32, %arg1: i32) -> (i32, i32) {
    %c0_i32 = arith.constant 0 : i32
    %c0_i32_0 = arith.constant 0 : i32
    %c0_i32_1 = arith.constant 0 : i32
    return %c0_i32, %c0_i32_0 : i32, i32
  }
  func.func @transform_3(%arg0: i32, %arg1: i32) -> (i32, i32) {
    %c0_i32 = arith.constant 0 : i32
    %c0_i32_0 = arith.constant 0 : i32
    return %arg0, %c0_i32 : i32, i32
  }
}

module attributes {stable_mosaic.version = 11 : i64} {
  func.func @_transform_kernel(%arg0: i32, %arg1: memref<128x128xbf16, #tpu.memory_space<vmem>>, %arg2: memref<128x128xbf16, #tpu.memory_space<vmem>>, %arg3: memref<128x128xbf16, #tpu.memory_space<vmem>>) attributes {dimension_semantics = [#tpu.dimension_semantics<parallel>], iteration_bounds = array<i64: 2>, scalar_prefetch = 0 : i64, scratch_operands = 0 : i64, tpu.core_type = #tpu.core_type<tc>, window_params = [{transform_indices = @transform_0, window_bounds = array<i64: 128, 128>}, {pipeline_mode = #tpu.pipeline_mode<synchronous>, transform_indices = @transform_1, window_bounds = array<i64: 128, 128>}, {transform_indices = @transform_2, window_bounds = array<i64: 128, 128>}]} {
    %c0 = arith.constant 0 : index
    %c0_0 = arith.constant 0 : index
    %0 = vector.load %arg1[%c0, %c0_0] : memref<128x128xbf16, #tpu.memory_space<vmem>>, vector<128x128xbf16>
    %c0_1 = arith.constant 0 : index
    %c0_2 = arith.constant 0 : index
    %1 = vector.load %arg2[%c0_1, %c0_2] : memref<128x128xbf16, #tpu.memory_space<vmem>>, vector<128x128xbf16>
    %cst = arith.constant dense<0.000000e+00> : vector<128x128xf32>
    %2 = tpu.matmul %0, %1, %cst {dimension_numbers = #tpu.dot_dimension_numbers<[1], [0], [0], [1], [0, 0, 1, 1], [], []>} : vector<128x128xbf16>, vector<128x128xbf16>, vector<128x128xf32> -> vector<128x128xf32>
    %3 = arith.truncf %2 : vector<128x128xf32> to vector<128x128xbf16>
    %c0_3 = arith.constant 0 : index
    %c0_4 = arith.constant 0 : index
    %4 = vector.load %arg3[%c0_3, %c0_4] : memref<128x128xbf16, #tpu.memory_space<vmem>>, vector<128x128xbf16>
    tpu.vector_store %arg3[%c0_3, %c0_4], %3 {strides = array<i32>} : memref<128x128xbf16, #tpu.memory_space<vmem>>, vector<128x128xbf16>,
    return
  }
  func.func @transform_0(%arg0: i32) -> (i32, i32) {
    %c0_i32 = arith.constant 0 : i32
    %c0_i32_0 = arith.constant 0 : i32
    return %arg0, %c0_i32 : i32, i32
  }
  func.func @transform_1(%arg0: i32) -> (i32, i32) {
    %c0_i32 = arith.constant 0 : i32
    %c0_i32_0 = arith.constant 0 : i32
    %c0_i32_1 = arith.constant 0 : i32
    return %c0_i32, %c0_i32_0 : i32, i32
  }
  func.func @transform_2(%arg0: i32) -> (i32, i32) {
    %c0_i32 = arith.constant 0 : i32
    %c0_i32_0 = arith.constant 0 : i32
    return %arg0, %c0_i32 : i32, i32
  }
}

module attributes {stable_mosaic.version = 11 : i64} {
  func.func @kernel(%arg0: i32, %arg1: i32, %arg2: memref<128x256xbf16, #tpu.memory_space<vmem>>, %arg3: memref<256x128xbf16, #tpu.memory_space<vmem>>, %arg4: memref<1x128xf32, #tpu.memory_space<vmem>>, %arg5: memref<128x128xbf16, #tpu.memory_space<vmem>>, %arg6: memref<128x128xbf16, #tpu.memory_space<vmem>>, %arg7: memref<128x128xf32, #tpu.memory_space<vmem>>) attributes {dimension_semantics = [#tpu.dimension_semantics<parallel>, #tpu.dimension_semantics<arbitrary>], iteration_bounds = array<i64: 2, 1>, scalar_prefetch = 0 : i64, scratch_operands = 1 : i64, tpu.core_type = #tpu.core_type<tc>, window_params = [{transform_indices = @transform_0, window_bounds = array<i64: 128, 256>}, {pipeline_mode = #tpu.pipeline_mode<synchronous>, transform_indices = @transform_1, window_bounds = array<i64: 256, 128>}, {pipeline_mode = #tpu.pipeline_mode<synchronous>, transform_indices = @transform_2, window_bounds = array<i64: 1, 128>}, {pipeline_mode = #tpu.pipeline_mode<synchronous>, transform_indices = @transform_3, window_bounds = array<i64: 128, 128>}, {transform_indices = @transform_4, window_bounds = array<i64: 128, 128>}]} {
    %c0_i32 = arith.constant 0 : i32
    %0 = arith.cmpi eq, %arg1, %c0_i32 : i32
    %1 = arith.extui %0 : i1 to i32
    %c0_i32_0 = arith.constant 0 : i32
    %2 = arith.cmpi ne, %1, %c0_i32_0 : i32
    scf.if %2 {
      %cst_9 = arith.constant 0.000000e+00 : f32
      %15 = vector.broadcast %cst_9 : f32 to vector<128x128xf32>
      %c0_10 = arith.constant 0 : index
      %c0_11 = arith.constant 0 : index
      %16 = vector.load %arg7[%c0_10, %c0_11] : memref<128x128xf32, #tpu.memory_space<vmem>>, vector<128x128xf32>
      tpu.vector_store %arg7[%c0_10, %c0_11], %15 {strides = array<i32>} : memref<128x128xf32, #tpu.memory_space<vmem>>, vector<128x128xf32>,
    } else {
    }
    %c256_i32 = arith.constant 256 : i32
    %3 = arith.muli %arg1, %c256_i32 : i32
    %4 = tpu.assume_multiple %3, 256 : i32
    %5 = arith.index_cast %4 : i32 to index
    %c0 = arith.constant 0 : index
    %6 = vector.load %arg3[%5, %c0] : memref<256x128xbf16, #tpu.memory_space<vmem>>, vector<256x128xbf16>
    %c0_1 = arith.constant 0 : index
    %c0_2 = arith.constant 0 : index
    %7 = vector.load %arg7[%c0_1, %c0_2] : memref<128x128xf32, #tpu.memory_space<vmem>>, vector<128x128xf32>
    %c0_3 = arith.constant 0 : index
    %c0_4 = arith.constant 0 : index
    %8 = vector.load %arg2[%c0_3, %c0_4] : memref<128x256xbf16, #tpu.memory_space<vmem>>, vector<128x256xbf16>
    %cst = arith.constant dense<0.000000e+00> : vector<128x128xf32>
    %9 = tpu.matmul %8, %6, %cst {dimension_numbers = #tpu.dot_dimension_numbers<[1], [0], [0], [1], [0, 0, 1, 1], [], []>} : vector<128x256xbf16>, vector<256x128xbf16>, vector<128x128xf32> -> vector<128x128xf32>
    %10 = arith.addf %7, %9 : vector<128x128xf32>
    %c0_5 = arith.constant 0 : index
    %c0_6 = arith.constant 0 : index
    %11 = vector.load %arg7[%c0_5, %c0_6] : memref<128x128xf32, #tpu.memory_space<vmem>>, vector<128x128xf32>
    tpu.vector_store %arg7[%c0_5, %c0_6], %10 {strides = array<i32>} : memref<128x128xf32, #tpu.memory_space<vmem>>, vector<128x128xf32>,
    %c0_i32_7 = arith.constant 0 : i32
    %12 = arith.cmpi eq, %arg1, %c0_i32_7 : i32
    %13 = arith.extui %12 : i1 to i32
    %c0_i32_8 = arith.constant 0 : i32
    %14 = arith.cmpi ne, %13, %c0_i32_8 : i32
    scf.if %14 {
      %c0_9 = arith.constant 0 : index
      %c0_10 = arith.constant 0 : index
      %15 = vector.load %arg7[%c0_9, %c0_10] : memref<128x128xf32, #tpu.memory_space<vmem>>, vector<128x128xf32>
      %c0_11 = arith.constant 0 : index
      %c0_12 = arith.constant 0 : index
      %16 = vector.load %arg4[%c0_11, %c0_12] : memref<1x128xf32, #tpu.memory_space<vmem>>, vector<1x128xf32>
      %17 = vector.broadcast %16 : vector<1x128xf32> to vector<128x128xf32>
      %18 = arith.addf %15, %17 : vector<128x128xf32>
      %cst_13 = arith.constant 0.000000e+00 : f32
      %19 = vector.broadcast %cst_13 : f32 to vector<128x128xf32>
      %20 = arith.maximumf %18, %19 : vector<128x128xf32>
      %21 = arith.truncf %20 : vector<128x128xf32> to vector<128x128xbf16>
      %c0_14 = arith.constant 0 : index
      %c0_15 = arith.constant 0 : index
      %22 = vector.load %arg5[%c0_14, %c0_15] : memref<128x128xbf16, #tpu.memory_space<vmem>>, vector<128x128xbf16>
      %cst_16 = arith.constant dense<0.000000e+00> : vector<128x128xf32>
      %23 = tpu.matmul %21, %22, %cst_16 {dimension_numbers = #tpu.dot_dimension_numbers<[1], [0], [0], [1], [0, 0, 1, 1], [], []>} : vector<128x128xbf16>, vector<128x128xbf16>, vector<128x128xf32> -> vector<128x128xf32>
      %24 = arith.truncf %23 : vector<128x128xf32> to vector<128x128xbf16>
      %c0_17 = arith.constant 0 : index
      %c0_18 = arith.constant 0 : index
      %25 = vector.load %arg6[%c0_17, %c0_18] : memref<128x128xbf16, #tpu.memory_space<vmem>>, vector<128x128xbf16>
      tpu.vector_store %arg6[%c0_17, %c0_18], %24 {strides = array<i32>} : memref<128x128xbf16, #tpu.memory_space<vmem>>, vector<128x128xbf16>,
    } else {
    }
    return
  }
  func.func @transform_0(%arg0: i32, %arg1: i32) -> (i32, i32) {
    %c0_i32 = arith.constant 0 : i32
    return %arg0, %arg1 : i32, i32
  }
  func.func @transform_1(%arg0: i32, %arg1: i32) -> (i32, i32) {
    %c0_i32 = arith.constant 0 : i32
    %c0_i32_0 = arith.constant 0 : i32
    %c0_i32_1 = arith.constant 0 : i32
    return %c0_i32, %c0_i32_0 : i32, i32
  }
  func.func @transform_2(%arg0: i32, %arg1: i32) -> (i32, i32) {
    %c0_i32 = arith.constant 0 : i32
    %c0_i32_0 = arith.constant 0 : i32
    %c0_i32_1 = arith.constant 0 : i32
    return %c0_i32, %c0_i32_0 : i32, i32
  }
  func.func @transform_3(%arg0: i32, %arg1: i32) -> (i32, i32) {
    %c0_i32 = arith.constant 0 : i32
    %c0_i32_0 = arith.constant 0 : i32
    %c0_i32_1 = arith.constant 0 : i32
    return %c0_i32, %c0_i32_0 : i32, i32
  }
  func.func @transform_4(%arg0: i32, %arg1: i32) -> (i32, i32) {
    %c0_i32 = arith.constant 0 : i32
    %c0_i32_0 = arith.constant 0 : i32
    return %arg0, %c0_i32 : i32, i32
  }
}

</mosaic_0001>

<bundles_post_ra>
// kernel: gcn_forward.3
= control target key start
LH: loop header
LB: loop body
LE: loop exit
PB: predicated region body
PF: predicated region fallthrough
CT: control target
= control target key end

     0   :  { %s726_s9 = smov 0   ;;  %s784_s0 = inlined_call_operand.vmem [shape: bf16[256,128], index: 0, kind: input, shape index: {}]   ;;  %s785_s1 = inlined_call_operand.vmem [shape: bf16[128,128], index: 1, kind: input, shape index: {}]   ;;  %s786_s2 = inlined_call_operand.vmem [shape: bf16[256,128], index: 2, kind: output, shape index: {}]  }
   0x1 LB: > { %s509_s10 = sadd.s32 4294967295, %s709_s9   ;;  %p513_p0 = scmp.ge.s32.totalorder %s709_s9, 1  ;;  %s709_s9 = sphi %s726_s9, %s12_s9  }
   0x2   : > { %p113_p1 = scmp.lt.s32.totalorder %s709_s9, 3 }
   0x4   : > { %p114_p2 = pnand %p513_p0, %p113_p1 }
   0x5   : > { %v687_v0 = vld [vmem:[%s785_s1] sm:$0xff] (!%p114_p2)   ;;  %s514_s13 = sshll.u32 (!%p114_p2), %s509_s10, 4  ;;  %v688_v1 = vld [vmem:[%s785_s1 + $0x8] sm:$0xff] (!%p114_p2)   ;;  %v689_v2 = vld [vmem:[%s785_s1 + $0x10] sm:$0xff] (!%p114_p2)  }
   0x6   : > { %117 = sbr.rel (%p114_p2) target bundleno = 264 (0x108), region = 28  ;;  %p136_p3 = scmp.lt.s32.totalorder (!%p114_p2), %s514_s13, 31  ;;  %631 = vmatprep.subr.bf16.mxu0 (!%p114_p2), %v687_v0  ;;  %663 = vmatprep.subr.bf16.mxu1 (!%p114_p2), %v687_v0  ;;  %v690_v3 = vld [vmem:[%s785_s1 + $0x18] sm:$0xff] (!%p114_p2)   ;;  %v691_v6 = vld [vmem:[%s785_s1 + $0x20] sm:$0xff] (!%p114_p2)   ;;  %v692_v7 = vld [vmem:[%s785_s1 + $0x28] sm:$0xff] (!%p114_p2)  }
   0x7   : > { %632 = vmatpush3.bf16.msra.mxu0 (!%p114_p2), %v687_v0  ;;  %671 = vmatpush3.bf16.msra.mxu1 (!%p114_p2), %v687_v0  ;;  %v693_v8 = vld [vmem:[%s785_s1 + $0x30] sm:$0xff] (!%p114_p2)   ;;  %v694_v9 = vld [vmem:[%s785_s1 + $0x38] sm:$0xff] (!%p114_p2)  }
   0x8   : > { %633 = vmatprep.subr.bf16.mxu0 (!%p114_p2), %v688_v1  ;;  %664 = vmatprep.subr.bf16.mxu1 (!%p114_p2), %v688_v1 }
   0xb   : > { %634 = vmatpush3.bf16.msra.mxu0 (!%p114_p2), %v688_v1  ;;  %672 = vmatpush3.bf16.msra.mxu1 (!%p114_p2), %v688_v1 }
   0xc   : > { %635 = vmatprep.subr.bf16.mxu0 (!%p114_p2), %v689_v2  ;;  %665 = vmatprep.subr.bf16.mxu1 (!%p114_p2), %v689_v2 }
   0xd   : > { %s788_s13 = smov (!%p136_p3, %s514_s13), 31 }
   0xe   : > { %s515_s18 = sshll.u32 %s788_s13, 2 }
   0xf   : > { %s751_s21 = scalar_lea.vmem %s784_s0, %s515_s18  ;;  %636 = vmatpush3.bf16.msra.mxu0 %v689_v2  ;;  %673 = vmatpush3.bf16.msra.mxu1 %v689_v2  ;;  %s145_s6 = scalar_lea.vmem %s786_s2, %s515_s18 }
  0x10   : > { %v695_v4 = vld [vmem:[%s751_s21] sm:$0xff]   ;;  %637 = vmatprep.subr.bf16.mxu0 %v690_v3  ;;  %666 = vmatprep.subr.bf16.mxu1 %v690_v3  ;;  %v697_v10 = vld [vmem:[%s751_s21 + $0x8] sm:$0xff]   ;;  %v699_v12 = vld [vmem:[%s751_s21 + $0x10] sm:$0xff]  }
  0x11   : > { %v696_v5 = vld [vmem:[%s751_s21 + $0x20] sm:$0xff]   ;;  %647 = vmatprep.mubr.bf16.mxu0 %v695_v4  ;;  %v698_v11 = vld [vmem:[%s751_s21 + $0x28] sm:$0xff]   ;;  %v700_v13 = vld [vmem:[%s751_s21 + $0x30] sm:$0xff]  }
  0x12   : > { %655 = vmatprep.mubr.bf16.mxu1 %v696_v5  ;;  %v701_v14 = vld [vmem:[%s751_s21 + $0x18] sm:$0xff]  }
  0x13   : > { %638 = vmatpush3.bf16.msra.mxu0 %v690_v3  ;;  %674 = vmatpush3.bf16.msra.mxu1 %v690_v3  ;;  %v702_v15 = vld [vmem:[%s751_s21 + $0x38] sm:$0xff]  }
  0x14   : > { %639 = vmatprep.subr.bf16.mxu0 %v691_v6  ;;  %667 = vmatprep.subr.bf16.mxu1 %v691_v6 }
  0x17   : > { %640 = vmatpush3.bf16.msra.mxu0 %v691_v6  ;;  %675 = vmatpush3.bf16.msra.mxu1 %v691_v6 }
  0x18   : > { %641 = vmatprep.subr.bf16.mxu0 %v692_v7  ;;  %668 = vmatprep.subr.bf16.mxu1 %v692_v7 }
  0x1b   : > { %642 = vmatpush3.bf16.msra.mxu0 %v692_v7  ;;  %676 = vmatpush3.bf16.msra.mxu1 %v692_v7 }
  0x1c   : > { %643 = vmatprep.subr.bf16.mxu0 %v693_v8  ;;  %669 = vmatprep.subr.bf16.mxu1 %v693_v8 }
  0x1f   : > { %644 = vmatpush3.bf16.msra.mxu0 %v693_v8  ;;  %677 = vmatpush3.bf16.msra.mxu1 %v693_v8 }
  0x20   : > { %645 = vmatprep.subr.bf16.mxu0 %v694_v9  ;;  %670 = vmatprep.subr.bf16.mxu1 %v694_v9 }
  0x23   : > { %646 = vmatpush3.bf16.msra.mxu0 %v694_v9  ;;  %678 = vmatpush3.bf16.msra.mxu1 %v694_v9 }
  0x26   : > { %648 = vmatmul.mubr.bf16.vlgmr.msra.gmra.mrb[0].mxu0 %v697_v10  ;;  %656 = vmatmul.mubr.bf16.vlgmr.msra.gmra.mrb[0].mxu1 %v698_v11 }
  0x27   : > { %651 = vmatprep.mubr.bf16.mxu0 %v699_v12  ;;  %659 = vmatprep.mubr.bf16.mxu1 %v700_v13 }
  0x2e   : > { %652 = vmatmul.mubr.bf16.gmra.mrb[4].mxu0 %v701_v14  ;;  %660 = vmatmul.mubr.bf16.gmra.mrb[4].mxu1 %v702_v15 }
  0xf9   : > { %v649_v16 = vpop.f32.mrb[0].mxu0  ;;  %v657_v17 = vpop.f32.mrb[0].mxu1 }
  0xfa   : > { %v310_v18 = vpop.f32.mrb[1].mxu0  ;;  %v342_v19 = vpop.f32.mrb[1].mxu1 }
  0xfb   : > { %v650_v20 = vpop.f32.mrb[2].mxu0  ;;  %v658_v21 = vpop.f32.mrb[2].mxu1 }
  0xfc   : > { %v576_v22 = vpack.c.bf16 %v650_v20, %v649_v16  ;;  %v596_v23 = vpack.c.bf16 %v658_v21, %v657_v17  ;;  %v313_v24 = vpop.f32.mrb[3].mxu0  ;;  %v345_v25 = vpop.f32.mrb[3].mxu1 }
  0xfd   : > { %v571_v26 = vpack.c.bf16 %v313_v24, %v310_v18  ;;  %v591_v27 = vpack.c.bf16 %v345_v25, %v342_v19 }
  0xfe   : > { %608 = vst [vmem:[%s145_s6 + $0x8] sm:$0xff] %v576_v22   ;;  %612 = vst [vmem:[%s145_s6 + $0x28] sm:$0xff] %v596_v23  }
  0xff   : > { %572 = vst [vmem:[%s145_s6] sm:$0xff] %v571_v26   ;;  %611 = vst [vmem:[%s145_s6 + $0x20] sm:$0xff] %v591_v27  }
 0x101   : > { %v653_v28 = vpop.f32.mrb[4].mxu0  ;;  %v661_v29 = vpop.f32.mrb[4].mxu1 }
 0x102   : > { %v326_v30 = vpop.f32.mrb[5].mxu0  ;;  %v358_v31 = vpop.f32.mrb[5].mxu1 }
 0x103   : > { %v654_v32 = vpop.f32.mrb[6].mxu0  ;;  %v662_v33 = vpop.f32.mrb[6].mxu1 }
 0x104   : > { %v586_v34 = vpack.c.bf16 %v654_v32, %v653_v28  ;;  %v606_v35 = vpack.c.bf16 %v662_v33, %v661_v29  ;;  %v329_v36 = vpop.f32.mrb[7].mxu0  ;;  %v361_v37 = vpop.f32.mrb[7].mxu1 }
 0x105   : > { %v581_v38 = vpack.c.bf16 %v329_v36, %v326_v30  ;;  %v601_v39 = vpack.c.bf16 %v361_v37, %v358_v31 }
 0x106   : > { %610 = vst [vmem:[%s145_s6 + $0x18] sm:$0xff] %v586_v34   ;;  %614 = vst [vmem:[%s145_s6 + $0x38] sm:$0xff] %v606_v35  }
 0x107   : > { %609 = vst [vmem:[%s145_s6 + $0x10] sm:$0xff] %v581_v38   ;;  %613 = vst [vmem:[%s145_s6 + $0x30] sm:$0xff] %v601_v39  }
 0x108 PF: > { %s12_s9 = sadd.s32 1, %s709_s9  }
 0x109   : > { %p9_p4 = scmp.ge.s32.totalorder %s12_s9, 4  }
 0x10b   :  { %11 = sbr.rel (!%p9_p4) target bundleno = 1 (0x1), region = 58 }

// kernel: gcn_forward.5
= control target key start
LH: loop header
LB: loop body
LE: loop exit
PB: predicated region body
PF: predicated region fallthrough
CT: control target
= control target key end

     0   :  { %s1240_s12 = smov 0   ;;  %s1242_s13 = smov 0   ;;  %s1596_s0 = inlined_call_operand.vmem [shape: bf16[256,256], index: 0, kind: input, shape index: {}]   ;;  %s1597_s1 = inlined_call_operand.vmem [shape: bf16[256,128], index: 1, kind: input, shape index: {}]   ;;  %s1598_s2 = inlined_call_operand.vmem [shape: f32[1,128], index: 2, kind: input, shape index: {}]   ;;  %s1599_s3 = inlined_call_operand.vmem [shape: f32[256,128], index: 3, kind: output, shape index: {}]  }
   0x1   :  { %s1244_s14 = smov 0  }
   0x2 LB: > { %s25_s15 = sadd.s32 1, %s1214_s13  ;;  %p946_p0 = scmp.ge.s32.totalorder %s1218_s14, 1  ;;  %s1218_s14 = sphi %s1244_s14, %s13_s14   ;;  %s1214_s13 = sphi %s1242_s13, %s1601_s13   ;;  %s1210_s12 = sphi %s1240_s12, %s1600_s12  }
   0x3   : > { %p27_p1 = scmp.ge.s32.totalorder %s25_s15, 2  ;;  %p158_p2 = scmp.lt.s32.totalorder %s1218_s14, 3 }
   0x5   : > { %s1603_s15 = smov (%p27_p1, %s25_s15), 0  ;;  %p159_p3 = pnand %p946_p0, %p158_p2 }
   0x6   : > { %v1092_v0 = vld [vmem:[%s1597_s1 + $0x40] sm:$0xff] (!%p159_p3)   ;;  %s947_s18 = sshll.u32 (!%p159_p3), %s1210_s12, 4  ;;  %v1094_v2 = vld [vmem:[%s1597_s1 + $0x48] sm:$0xff] (!%p159_p3)   ;;  %v1096_v4 = vld [vmem:[%s1597_s1 + $0x50] sm:$0xff] (!%p159_p3)   ;;  %v642_v32 = vlaneseq (!%p159_p3) }
   0x7   : > { %162 = sbr.rel (%p159_p3) target bundleno = 612 (0x264), region = 32  ;;  %v1093_v1 = vld [vmem:[%s1597_s1] sm:$0xff] (!%p159_p3)   ;;  %988 = vmatprep.subr.bf16.mxu0 (!%p159_p3), %v1092_v0  ;;  %1052 = vmatprep.subr.bf16.mxu1 (!%p159_p3), %v1092_v0  ;;  %v1095_v3 = vld [vmem:[%s1597_s1 + $0x8] sm:$0xff] (!%p159_p3)   ;;  %p189_p4 = scmp.lt.s32.totalorder (!%p159_p3), %s947_s18, 31  ;;  %v1097_v5 = vld [vmem:[%s1597_s1 + $0x10] sm:$0xff] (!%p159_p3)  }
   0x8   : > { %989 = vmatpush3.bf16.msra.mxu0 (!%p159_p3), %v1093_v1  ;;  %1060 = vmatpush3.bf16.msra.mxu1 (!%p159_p3), %v1093_v1  ;;  %v1098_v6 = vld [vmem:[%s1597_s1 + $0x58] sm:$0xff] (!%p159_p3)   ;;  %v1100_v8 = vld [vmem:[%s1597_s1 + $0x60] sm:$0xff] (!%p159_p3)   ;;  %v1102_v10 = vld [vmem:[%s1597_s1 + $0x68] sm:$0xff] (!%p159_p3)   ;;  %v1332_v33 = vand.u32 (!%p159_p3), 127, %v642_v32 }
   0x9   : > { %990 = vmatprep.subr.bf16.mxu0 (!%p159_p3), %v1094_v2  ;;  %1053 = vmatprep.subr.bf16.mxu1 (!%p159_p3), %v1094_v2  ;;  %v1099_v7 = vld [vmem:[%s1597_s1 + $0x18] sm:$0xff] (!%p159_p3)   ;;  %v1101_v9 = vld [vmem:[%s1597_s1 + $0x20] sm:$0xff] (!%p159_p3)   ;;  %v1103_v13 = vld [vmem:[%s1597_s1 + $0x28] sm:$0xff] (!%p159_p3)  }
   0xa   : > { %v1104_v14 = vld [vmem:[%s1597_s1 + $0x70] sm:$0xff] (!%p159_p3)   ;;  %v1106_v16 = vld [vmem:[%s1597_s1 + $0x78] sm:$0xff] (!%p159_p3)   ;;  %v1337_v37 = vld [vmem:[%s1598_s2] ss:$0 sm:$0xff] (!%p159_p3)  ;;  %vm644_vm0 = vcmp.lt.s32.totalorder (!%p159_p3), %v1332_v33, 8 }
   0xb   : > { %v1105_v15 = vld [vmem:[%s1597_s1 + $0x30] sm:$0xff] (!%p159_p3)   ;;  %v1107_v17 = vld [vmem:[%s1597_s1 + $0x38] sm:$0xff] (!%p159_p3)  }
   0xc   : > { %991 = vmatpush3.bf16.msra.mxu0 (!%p159_p3), %v1095_v3  ;;  %1061 = vmatpush3.bf16.msra.mxu1 (!%p159_p3), %v1095_v3 }
   0xd   : > { %992 = vmatprep.subr.bf16.mxu0 (!%p159_p3), %v1096_v4  ;;  %1054 = vmatprep.subr.bf16.mxu1 (!%p159_p3), %v1096_v4 }
   0xe   : > { %s1605_s18 = smov (!%p189_p4, %s947_s18), 31 }
   0xf   : > { %s987_s6 = sshll.u32 %s1605_s18, 3 }
  0x10   : > { %993 = vmatpush3.bf16.msra.mxu0 %v1097_v5  ;;  %1062 = vmatpush3.bf16.msra.mxu1 %v1097_v5  ;;  %s1293_s11 = scalar_lea.vmem %s1596_s0, %s987_s6  ;;  %s1538_s8 = scalar_lea.vmem %s1599_s3, %s987_s6 }
  0x11   : > { %994 = vmatprep.subr.bf16.mxu0 %v1098_v6  ;;  %1055 = vmatprep.subr.bf16.mxu1 %v1098_v6  ;;  %v1110_v11 = vld [vmem:[%s1293_s11 + $0x4] ss:$8 sps:$4 sm:$0xff]   ;;  %v1108_v18 = vld [vmem:[%s1293_s11] ss:$8 sps:$4 sm:$0xff]   ;;  %v1114_v20 = vld [vmem:[%s1293_s11 + $0x14] ss:$8 sps:$4 sm:$0xff]  }
  0x12   : > { %v1113_v12 = vld [vmem:[%s1293_s11 + $0x44] ss:$8 sps:$4 sm:$0xff]   ;;  %503 = vmatprep.mubr.bf16.mxu0 %v1110_v11  ;;  %v1111_v19 = vld [vmem:[%s1293_s11 + $0x40] ss:$8 sps:$4 sm:$0xff]   ;;  %v1117_v21 = vld [vmem:[%s1293_s11 + $0x54] ss:$8 sps:$4 sm:$0xff]  }
  0x13   : > { %535 = vmatprep.mubr.bf16.mxu1 %v1113_v12  ;;  %v1116_v22 = vld [vmem:[%s1293_s11 + $0x10] ss:$8 sps:$4 sm:$0xff]   ;;  %v1120_v24 = vld [vmem:[%s1293_s11 + $0x24] ss:$8 sps:$4 sm:$0xff]   ;;  %v1122_v26 = vld [vmem:[%s1293_s11 + $0x20] ss:$8 sps:$4 sm:$0xff]  }
  0x14   : > { %995 = vmatpush3.bf16.msra.mxu0 %v1099_v7  ;;  %1063 = vmatpush3.bf16.msra.mxu1 %v1099_v7  ;;  %v1119_v23 = vld [vmem:[%s1293_s11 + $0x50] ss:$8 sps:$4 sm:$0xff]   ;;  %v1123_v25 = vld [vmem:[%s1293_s11 + $0x64] ss:$8 sps:$4 sm:$0xff]   ;;  %v1125_v27 = vld [vmem:[%s1293_s11 + $0x60] ss:$8 sps:$4 sm:$0xff]  }
  0x15   : > { %996 = vmatprep.subr.bf16.mxu0 %v1100_v8  ;;  %1056 = vmatprep.subr.bf16.mxu1 %v1100_v8  ;;  %v1126_v28 = vld [vmem:[%s1293_s11 + $0x34] ss:$8 sps:$4 sm:$0xff]   ;;  %v1128_v30 = vld [vmem:[%s1293_s11 + $0x30] ss:$8 sps:$4 sm:$0xff]  }
  0x16   : > { %v1129_v29 = vld [vmem:[%s1293_s11 + $0x74] ss:$8 sps:$4 sm:$0xff]   ;;  %v1131_v31 = vld [vmem:[%s1293_s11 + $0x70] ss:$8 sps:$4 sm:$0xff]  }
  0x18   : > { %997 = vmatpush3.bf16.msra.mxu0 %v1101_v9  ;;  %1064 = vmatpush3.bf16.msra.mxu1 %v1101_v9 }
  0x19   : > { %998 = vmatprep.subr.bf16.mxu0 %v1102_v10  ;;  %1057 = vmatprep.subr.bf16.mxu1 %v1102_v10 }
  0x1c   : > { %999 = vmatpush3.bf16.msra.mxu0 %v1103_v13  ;;  %1065 = vmatpush3.bf16.msra.mxu1 %v1103_v13 }
  0x1d   : > { %1000 = vmatprep.subr.bf16.mxu0 %v1104_v14  ;;  %1058 = vmatprep.subr.bf16.mxu1 %v1104_v14 }
  0x20   : > { %1001 = vmatpush3.bf16.msra.mxu0 %v1105_v15  ;;  %1066 = vmatpush3.bf16.msra.mxu1 %v1105_v15 }
  0x21   : > { %1002 = vmatprep.subr.bf16.mxu0 %v1106_v16  ;;  %1059 = vmatprep.subr.bf16.mxu1 %v1106_v16 }
  0x24   : > { %1003 = vmatpush3.bf16.msra.mxu0 %v1107_v17  ;;  %1067 = vmatpush3.bf16.msra.mxu1 %v1107_v17 }
  0x27   : > { %504 = vmatmul.mubr.bf16.vlgmr.msra.gmra.mrb[0].mxu0 %v1108_v18  ;;  %536 = vmatmul.mubr.bf16.vlgmr.msra.gmra.mrb[0].mxu1 %v1111_v19 }
  0x28   : > { %511 = vmatprep.mubr.bf16.mxu0 %v1114_v20  ;;  %543 = vmatprep.mubr.bf16.mxu1 %v1117_v21 }
  0x2f   : > { %512 = vmatmul.mubr.bf16.gmra.mrb[4].mxu0 %v1116_v22  ;;  %544 = vmatmul.mubr.bf16.gmra.mrb[4].mxu1 %v1119_v23 }
  0x30   : > { %519 = vmatprep.mubr.bf16.mxu0 %v1120_v24  ;;  %551 = vmatprep.mubr.bf16.mxu1 %v1123_v25 }
  0x37   : > { %520 = vmatmul.mubr.bf16.gmra.mrb[8].mxu0 %v1122_v26  ;;  %552 = vmatmul.mubr.bf16.gmra.mrb[8].mxu1 %v1125_v27 }
  0x38   : > { %527 = vmatprep.mubr.bf16.mxu0 %v1126_v28  ;;  %559 = vmatprep.mubr.bf16.mxu1 %v1129_v29 }
  0x3f   : > { %528 = vmatmul.mubr.bf16.gmra.mrb[12].mxu0 %v1128_v30  ;;  %560 = vmatmul.mubr.bf16.gmra.mrb[12].mxu1 %v1131_v31 }
  0xfa   : > { %v1004_v34 = vpop.f32.mrb[0].mxu0  ;;  %v1028_v35 = vpop.f32.mrb[0].mxu1 }
  0xfb   : > { %v1005_v36 = vpop.f32.mrb[1].mxu0  ;;  %v1029_v38 = vpop.f32.mrb[1].mxu1 }
  0xfc   : > { %v1006_v39 = vadd.f32 %v1005_v36, %v1004_v34  ;;  %v1030_v40 = vadd.f32 %v1029_v38, %v1028_v35  ;;  %v1007_v41 = vpop.f32.mrb[2].mxu0  ;;  %v1031_v42 = vpop.f32.mrb[2].mxu1 }
  0xfd   : > { %v1008_v43 = vpop.f32.mrb[3].mxu0  ;;  %v1032_v44 = vpop.f32.mrb[3].mxu1 }
  0xfe   : > { %v1341_v45 = vadd.f32 %v1006_v39, %v1337_v37  ;;  %v1344_v46 = vadd.f32 %v1030_v40, %v1337_v37  ;;  %v1009_v47 = vadd.f32 %v1008_v43, %v1007_v41  ;;  %v1033_v48 = vadd.f32 %v1032_v44, %v1031_v42 }
 0x100   : > { %v1347_v49 = vadd.f32 %v1033_v48, %v1337_v37  ;;  %v645_v50 = vsel %vm644_vm0, %v1341_v45, -inf  ;;  %v653_v53 = vsel %vm644_vm0, %v1344_v46, -inf  ;;  %v1359_v57 = vadd.f32 %v1009_v47, %v1337_v37 }
 0x101   : > { %661 = vmax.xlane.f32.xlu0 %v645_v50 }
 0x102   : > { %v1010_v51 = vpop.f32.mrb[4].mxu0  ;;  %v654_v52 = vsel %vm644_vm0, %v1347_v49, -inf  ;;  %v1034_v54 = vpop.f32.mrb[4].mxu1  ;;  %v646_v6 = vsel %vm644_vm0, %v1359_v57, -inf }
 0x103   : > { %679 = vmax.xlane.f32.xlu1 %v654_v52  ;;  %v1011_v55 = vpop.f32.mrb[5].mxu0  ;;  %v1035_v56 = vpop.f32.mrb[5].mxu1 }
 0x104   : > { %v1012_v58 = vadd.f32 %v1011_v55, %v1010_v51  ;;  %v1013_v59 = vpop.f32.mrb[6].mxu0  ;;  %v1036_v60 = vadd.f32 %v1035_v56, %v1034_v54  ;;  %v1037_v61 = vpop.f32.mrb[6].mxu1 }
 0x105   : > { %677 = vmax.xlane.f32.xlu0 %v653_v53  ;;  %v1014_v62 = vpop.f32.mrb[7].mxu0  ;;  %v1038_v63 = vpop.f32.mrb[7].mxu1 }
 0x106   : > { %v1362_v0 = vadd.f32 %v1012_v58, %v1337_v37  ;;  %v1015_v1 = vadd.f32 %v1014_v62, %v1013_v59  ;;  %v1365_v2 = vadd.f32 %v1036_v60, %v1337_v37  ;;  %v1039_v3 = vadd.f32 %v1038_v63, %v1037_v61 }
 0x108   : > { %v1368_v4 = vadd.f32 %v1015_v1, %v1337_v37  ;;  %v647_v5 = vsel %vm644_vm0, %v1362_v0, -inf  ;;  %v1377_v7 = vadd.f32 %v1039_v3, %v1337_v37  ;;  %v655_v10 = vsel %vm644_vm0, %v1365_v2, -inf }
 0x109   : > { %665 = vmax.xlane.f32.xlu1 %v647_v5  ;;  %663 = vmax.xlane.f32.xlu0 %v646_v6 }
 0x10a   : > { %v1016_v8 = vpop.f32.mrb[8].mxu0  ;;  %v648_v9 = vsel %vm644_vm0, %v1368_v4, -inf  ;;  %v1040_v11 = vpop.f32.mrb[8].mxu1  ;;  %v656_v19 = vsel %vm644_vm0, %v1377_v7, -inf }
 0x10b   : > { %v1017_v12 = vpop.f32.mrb[9].mxu0  ;;  %v1041_v13 = vpop.f32.mrb[9].mxu1 }
 0x10c   : > { %v1018_v14 = vadd.f32 %v1017_v12, %v1016_v8  ;;  %v1019_v15 = vpop.f32.mrb[10].mxu0  ;;  %v1042_v16 = vadd.f32 %v1041_v13, %v1040_v11  ;;  %v1043_v17 = vpop.f32.mrb[10].mxu1 }
 0x10d   : > { %667 = vmax.xlane.f32.xlu1 %v648_v9  ;;  %681 = vmax.xlane.f32.xlu0 %v655_v10  ;;  %v1020_v18 = vpop.f32.mrb[11].mxu0  ;;  %v1044_v20 = vpop.f32.mrb[11].mxu1 }
 0x10e   : > { %v1389_v21 = vadd.f32 %v1018_v14, %v1337_v37  ;;  %v1021_v22 = vadd.f32 %v1020_v18, %v1019_v15  ;;  %v1392_v23 = vadd.f32 %v1042_v16, %v1337_v37  ;;  %v1045_v24 = vadd.f32 %v1044_v20, %v1043_v17 }
 0x110   : > { %v1395_v25 = vadd.f32 %v1021_v22, %v1337_v37  ;;  %v649_v26 = vsel %vm644_vm0, %v1389_v21, -inf  ;;  %v1401_v27 = vadd.f32 %v1045_v24, %v1337_v37  ;;  %v657_v30 = vsel %vm644_vm0, %v1392_v23, -inf }
 0x111   : > { %683 = vmax.xlane.f32.xlu1 %v656_v19  ;;  %669 = vmax.xlane.f32.xlu0 %v649_v26 }
 0x112   : > { %v1022_v28 = vpop.f32.mrb[12].mxu0  ;;  %v650_v29 = vsel %vm644_vm0, %v1395_v25, -inf  ;;  %v1046_v31 = vpop.f32.mrb[12].mxu1  ;;  %v658_v41 = vsel %vm644_vm0, %v1401_v27, -inf }
 0x113   : > { %v1023_v32 = vpop.f32.mrb[13].mxu0  ;;  %v1047_v34 = vpop.f32.mrb[13].mxu1 }
 0x114   : > { %v1024_v35 = vadd.f32 %v1023_v32, %v1022_v28  ;;  %v1025_v36 = vpop.f32.mrb[14].mxu0  ;;  %v1048_v38 = vadd.f32 %v1047_v34, %v1046_v31  ;;  %v1049_v39 = vpop.f32.mrb[14].mxu1 }
 0x115   : > { %671 = vmax.xlane.f32.xlu1 %v650_v29  ;;  %685 = vmax.xlane.f32.xlu0 %v657_v30  ;;  %v1026_v40 = vpop.f32.mrb[15].mxu0  ;;  %v1050_v42 = vpop.f32.mrb[15].mxu1 }
 0x116   : > { %v1413_v43 = vadd.f32 %v1024_v35, %v1337_v37  ;;  %v1027_v44 = vadd.f32 %v1026_v40, %v1025_v36  ;;  %v1416_v47 = vadd.f32 %v1048_v38, %v1337_v37  ;;  %v1051_v48 = vadd.f32 %v1050_v42, %v1049_v39 }
 0x118   : > { %v1419_v50 = vadd.f32 %v1027_v44, %v1337_v37  ;;  %v651_v51 = vsel %vm644_vm0, %v1413_v43, -inf  ;;  %v1425_v52 = vadd.f32 %v1051_v48, %v1337_v37  ;;  %v659_v54 = vsel %vm644_vm0, %v1416_v47, -inf }
 0x119   : > { %687 = vmax.xlane.f32.xlu1 %v658_v41  ;;  %673 = vmax.xlane.f32.xlu0 %v651_v51 }
 0x11a   : > { %v652_v53 = vsel %vm644_vm0, %v1419_v50, -inf  ;;  %v660_v55 = vsel %vm644_vm0, %v1425_v52, -inf }
 0x11d   : > { %675 = vmax.xlane.f32.xlu1 %v652_v53  ;;  %689 = vmax.xlane.f32.xlu0 %v659_v54 }
 0x121   : > { %691 = vmax.xlane.f32.xlu1 %v660_v55 }
 0x18e   : > { %v1436_v56 = vpop.xlane.xlu0 %661 }
 0x18f   : > { %v693_v37 = vsub.f32 %v1341_v45, %v1436_v56 }
 0x190   : > { %v1440_v59 = vpop.xlane.xlu1 %679 }
 0x191   : > { %v709_v58 = vmul.f32 1.442695, %v693_v37  ;;  %v702_v63 = vsub.f32 %v1347_v49, %v1440_v59 }
 0x192   : > { %v1442_v60 = vpop.xlane.xlu0 %677 }
 0x193   : > { %1132 = vpow2.f32 %v709_v58  ;;  %v701_v61 = vsub.f32 %v1344_v46, %v1442_v60  ;;  %v727_v10 = vmul.f32 1.442695, %v702_v63 }
 0x195   : > { %v725_v62 = vmul.f32 1.442695, %v701_v61 }
 0x196   : > { %v1448_v1 = vpop.xlane.xlu1 %665  ;;  %v1450_v3 = vpop.xlane.xlu0 %663 }
 0x197   : > { %1134 = vpow2.f32 %v725_v62  ;;  %v695_v5 = vsub.f32 %v1362_v0, %v1448_v1  ;;  %v694_v6 = vsub.f32 %v1359_v57, %v1450_v3 }
 0x199   : > { %v713_v8 = vmul.f32 1.442695, %v695_v5  ;;  %v711_v9 = vmul.f32 1.442695, %v694_v6 }
 0x19a   : > { %v1456_v11 = vpop.xlane.xlu1 %667  ;;  %v1458_v12 = vpop.xlane.xlu0 %681 }
 0x19b   : > { %1136 = vpow2.f32 %v713_v8  ;;  %v696_v13 = vsub.f32 %v1368_v4, %v1456_v11  ;;  %v703_v14 = vsub.f32 %v1365_v2, %v1458_v12 }
 0x19c   : > { %1138 = vpow2.f32 %v711_v9 }
 0x19d   : > { %v1133_v15 = vpop.eup %1132  ;;  %v729_v16 = vmul.f32 1.442695, %v703_v14  ;;  %1140 = vpow2.f32 %v727_v10  ;;  %v715_v17 = vmul.f32 1.442695, %v696_v13 }
 0x19e   : > { %v1464_v18 = vpop.xlane.xlu1 %683  ;;  %v1466_v19 = vpop.xlane.xlu0 %669  ;;  %v741_v20 = vsel %vm644_vm0, %v1133_v15, 0.0 }
 0x19f   : > { %v704_v22 = vsub.f32 %v1377_v7, %v1464_v18  ;;  %v697_v24 = vsub.f32 %v1389_v21, %v1466_v19  ;;  %757 = vadd.xlane.f32.xlu0 %v741_v20  ;;  %1142 = vpow2.f32 %v729_v16 }
 0x1a0   : > { %1144 = vpow2.f32 %v715_v17 }
 0x1a1   : > { %v1135_v26 = vpop.eup %1134  ;;  %v717_v28 = vmul.f32 1.442695, %v697_v24  ;;  %v731_v29 = vmul.f32 1.442695, %v704_v22 }
 0x1a2   : > { %v1474_v30 = vpop.xlane.xlu1 %671  ;;  %v1476_v31 = vpop.xlane.xlu0 %685  ;;  %v749_v32 = vsel %vm644_vm0, %v1135_v26, 0.0 }
 0x1a3   : > { %v698_v34 = vsub.f32 %v1395_v25, %v1474_v30  ;;  %v705_v35 = vsub.f32 %v1392_v23, %v1476_v31  ;;  %773 = vadd.xlane.f32.xlu0 %v749_v32  ;;  %1146 = vpow2.f32 %v717_v28 }
 0x1a4   : > { %1148 = vpow2.f32 %v731_v29 }
 0x1a5   : > { %v1137_v36 = vpop.eup %1136  ;;  %v733_v38 = vmul.f32 1.442695, %v705_v35  ;;  %v719_v40 = vmul.f32 1.442695, %v698_v34 }
 0x1a6   : > { %v1139_v39 = vpop.eup %1138  ;;  %v1484_v41 = vpop.xlane.xlu1 %687  ;;  %v743_v44 = vsel %vm644_vm0, %v1137_v36, 0.0 }
 0x1a7   : > { %v1486_v42 = vpop.xlane.xlu0 %673  ;;  %v706_v48 = vsub.f32 %v1401_v27, %v1484_v41  ;;  %761 = vadd.xlane.f32.xlu0 %v743_v44  ;;  %v742_v53 = vsel %vm644_vm0, %v1139_v39, 0.0  ;;  %v1141_v54 = vpop.eup %1140  ;;  %1150 = vpow2.f32 %v733_v38 }
 0x1a8   : > { %v699_v51 = vsub.f32 %v1413_v43, %v1486_v42  ;;  %759 = vadd.xlane.f32.xlu1 %v742_v53  ;;  %1152 = vpow2.f32 %v719_v40  ;;  %v750_v6 = vsel %vm644_vm0, %v1141_v54, 0.0 }
 0x1a9   : > { %v1143_v37 = vpop.eup %1142  ;;  %v735_v58 = vmul.f32 1.442695, %v706_v48 }
 0x1aa   : > { %v721_v55 = vmul.f32 1.442695, %v699_v51  ;;  %v1496_v61 = vpop.xlane.xlu1 %675  ;;  %v751_v8 = vsel %vm644_vm0, %v1143_v37, 0.0  ;;  %v1145_v9 = vpop.eup %1144 }
 0x1ab   : > { %v1498_v62 = vpop.xlane.xlu0 %689  ;;  %v700_v63 = vsub.f32 %v1419_v50, %v1496_v61  ;;  %777 = vadd.xlane.f32.xlu0 %v751_v8  ;;  %v744_v17 = vsel %vm644_vm0, %v1145_v9, 0.0 }
 0x1ac   : > { %v707_v5 = vsub.f32 %v1416_v47, %v1498_v62  ;;  %1154 = vpow2.f32 %v721_v55  ;;  %775 = vadd.xlane.f32.xlu1 %v750_v6 }
 0x1ad   : > { %v1147_v13 = vpop.eup %1146  ;;  %1156 = vpow2.f32 %v735_v58  ;;  %v723_v14 = vmul.f32 1.442695, %v700_v63 }
 0x1ae   : > { %v737_v10 = vmul.f32 1.442695, %v707_v5  ;;  %v1508_v15 = vpop.xlane.xlu1 %691  ;;  %v745_v20 = vsel %vm644_vm0, %v1147_v13, 0.0  ;;  %v1149_v22 = vpop.eup %1148 }
 0x1af   : > { %v708_v16 = vsub.f32 %v1425_v52, %v1508_v15  ;;  %765 = vadd.xlane.f32.xlu0 %v745_v20  ;;  %v752_v28 = vsel %vm644_vm0, %v1149_v22, 0.0 }
 0x1b0   : > { %1158 = vpow2.f32 %v737_v10  ;;  %763 = vadd.xlane.f32.xlu1 %v744_v17 }
 0x1b1   : > { %v1151_v24 = vpop.eup %1150  ;;  %1160 = vpow2.f32 %v723_v14  ;;  %v739_v26 = vmul.f32 1.442695, %v708_v16 }
 0x1b2   : > { %v753_v29 = vsel %vm644_vm0, %v1151_v24, 0.0  ;;  %v1153_v32 = vpop.eup %1152 }
 0x1b3   : > { %781 = vadd.xlane.f32.xlu0 %v753_v29  ;;  %1162 = vpow2.f32 %v739_v26  ;;  %v746_v35 = vsel %vm644_vm0, %v1153_v32, 0.0 }
 0x1b4   : > { %779 = vadd.xlane.f32.xlu1 %v752_v28 }
 0x1b6   : > { %v1155_v34 = vpop.eup %1154 }
 0x1b7   : > { %v747_v36 = vsel %vm644_vm0, %v1155_v34, 0.0  ;;  %v1157_v38 = vpop.eup %1156 }
 0x1b8   : > { %767 = vadd.xlane.f32.xlu1 %v746_v35  ;;  %769 = vadd.xlane.f32.xlu0 %v747_v36  ;;  %v754_v40 = vsel %vm644_vm0, %v1157_v38, 0.0 }
 0x1ba   : > { %v1159_v39 = vpop.eup %1158 }
 0x1bb   : > { %v755_v44 = vsel %vm644_vm0, %v1159_v39, 0.0  ;;  %v1161_v48 = vpop.eup %1160 }
 0x1bc   : > { %783 = vadd.xlane.f32.xlu1 %v754_v40  ;;  %785 = vadd.xlane.f32.xlu0 %v755_v44  ;;  %v748_v51 = vsel %vm644_vm0, %v1161_v48, 0.0 }
 0x1bd   : > { %v1163_v53 = vpop.eup %1162 }
 0x1be   : > { %v756_v54 = vsel %vm644_vm0, %v1163_v53, 0.0 }
 0x1c0   : > { %771 = vadd.xlane.f32.xlu1 %v748_v51 }
 0x1c4   : > { %787 = vadd.xlane.f32.xlu1 %v756_v54 }
 0x22c   : > { %v758_v55 = vpop.xlane.xlu0 %757 }
 0x22d   : > { %1164 = vlog2.f32 %v758_v55 }
 0x230   : > { %v774_v37 = vpop.xlane.xlu0 %773 }
 0x231   : > { %1166 = vlog2.f32 %v774_v37 }
 0x234   : > { %v762_v58 = vpop.xlane.xlu0 %761 }
 0x235   : > { %v760_v63 = vpop.xlane.xlu1 %759  ;;  %1168 = vlog2.f32 %v762_v58 }
 0x236   : > { %1170 = vlog2.f32 %v760_v63 }
 0x237   : > { %v1165_v5 = vpop.eup %1164 }
 0x238   : > { %v790_v6 = vmul.f32 0.6931472, %v1165_v5  ;;  %v778_v9 = vpop.xlane.xlu0 %777 }
 0x239   : > { %v776_v8 = vpop.xlane.xlu1 %775 }
 0x23a   : > { %v821_v10 = vadd.f32 %v790_v6, %v1436_v56  ;;  %1172 = vlog2.f32 %v776_v8 }
 0x23b   : > { %v1167_v13 = vpop.eup %1166  ;;  %1174 = vlog2.f32 %v778_v9 }
 0x23c   : > { %v837_v33 = vsub.f32 %v1341_v45, %v821_v10  ;;  %v806_v14 = vmul.f32 0.6931472, %v1167_v13  ;;  %v766_v17 = vpop.xlane.xlu0 %765 }
 0x23d   : > { %v764_v16 = vpop.xlane.xlu1 %763 }
 0x23e   : > { %853 = vst [vmem:[%s1538_s8] sm:$0xff] %v837_v33  ;;  %v829_v20 = vadd.f32 %v806_v14, %v1442_v60  ;;  %1176 = vlog2.f32 %v764_v16 }
 0x23f   : > { %v1169_v56 = vpop.eup %1168  ;;  %1178 = vlog2.f32 %v766_v17 }
 0x240   : > { %v1171_v22 = vpop.eup %1170  ;;  %v845_v24 = vsub.f32 %v1344_v46, %v829_v20  ;;  %v794_v26 = vmul.f32 0.6931472, %v1169_v56  ;;  %v782_v32 = vpop.xlane.xlu0 %781 }
 0x241   : > { %v792_v28 = vmul.f32 0.6931472, %v1171_v22  ;;  %v780_v29 = vpop.xlane.xlu1 %779 }
 0x242   : > { %861 = vst [vmem:[%s1538_s8 + $0x40] sm:$0xff] %v845_v24  ;;  %v823_v45 = vadd.f32 %v794_v26, %v1448_v1  ;;  %1180 = vlog2.f32 %v780_v29 }
 0x243   : > { %v822_v34 = vadd.f32 %v792_v28, %v1450_v3  ;;  %1182 = vlog2.f32 %v782_v32 }
 0x244   : > { %v1173_v60 = vpop.eup %1172  ;;  %v839_v35 = vsub.f32 %v1362_v0, %v823_v45 }
 0x245   : > { %v1175_v36 = vpop.eup %1174  ;;  %v838_v38 = vsub.f32 %v1359_v57, %v822_v34  ;;  %v808_v46 = vmul.f32 0.6931472, %v1173_v60  ;;  %v768_v39 = vpop.xlane.xlu1 %767 }
 0x246   : > { %v770_v40 = vpop.xlane.xlu0 %769  ;;  %855 = vst [vmem:[%s1538_s8 + $0x10] sm:$0xff] %v839_v35  ;;  %v810_v44 = vmul.f32 0.6931472, %v1175_v36  ;;  %1184 = vlog2.f32 %v768_v39 }
 0x247   : > { %854 = vst [vmem:[%s1538_s8 + $0x8] sm:$0xff] %v838_v38  ;;  %v830_v1 = vadd.f32 %v808_v46, %v1440_v59  ;;  %1186 = vlog2.f32 %v770_v40 }
 0x248   : > { %v1177_v3 = vpop.eup %1176  ;;  %v831_v48 = vadd.f32 %v810_v44, %v1458_v12 }
 0x249   : > { %v1179_v51 = vpop.eup %1178  ;;  %v846_v0 = vsub.f32 %v1347_v49, %v830_v1  ;;  %v796_v53 = vmul.f32 0.6931472, %v1177_v3  ;;  %v784_v57 = vpop.xlane.xlu1 %783 }
 0x24a   : > { %v786_v54 = vpop.xlane.xlu0 %785  ;;  %v847_v55 = vsub.f32 %v1365_v2, %v831_v48  ;;  %v798_v37 = vmul.f32 0.6931472, %v1179_v51  ;;  %1188 = vlog2.f32 %v784_v57 }
 0x24b   : > { %862 = vst [vmem:[%s1538_s8 + $0x48] sm:$0xff] %v846_v0  ;;  %v824_v59 = vadd.f32 %v796_v53, %v1456_v11  ;;  %1190 = vlog2.f32 %v786_v54 }
 0x24c   : > { %v1181_v58 = vpop.eup %1180  ;;  %863 = vst [vmem:[%s1538_s8 + $0x50] sm:$0xff] %v847_v55  ;;  %v825_v12 = vadd.f32 %v798_v37, %v1466_v19 }
 0x24d   : > { %v1183_v63 = vpop.eup %1182  ;;  %v840_v49 = vsub.f32 %v1368_v4, %v824_v59  ;;  %v812_v5 = vmul.f32 0.6931472, %v1181_v58  ;;  %v772_v6 = vpop.xlane.xlu1 %771 }
 0x24e   : > { %v841_v2 = vsub.f32 %v1389_v21, %v825_v12  ;;  %v814_v8 = vmul.f32 0.6931472, %v1183_v63  ;;  %1192 = vlog2.f32 %v772_v6 }
 0x24f   : > { %856 = vst [vmem:[%s1538_s8 + $0x18] sm:$0xff] %v840_v49  ;;  %v832_v9 = vadd.f32 %v812_v5, %v1464_v18 }
 0x250   : > { %v1185_v11 = vpop.eup %1184  ;;  %857 = vst [vmem:[%s1538_s8 + $0x20] sm:$0xff] %v841_v2  ;;  %v833_v10 = vadd.f32 %v814_v8, %v1476_v31 }
 0x251   : > { %v1187_v13 = vpop.eup %1186  ;;  %v848_v19 = vsub.f32 %v1377_v7, %v832_v9  ;;  %v800_v4 = vmul.f32 0.6931472, %v1185_v11  ;;  %v788_v33 = vpop.xlane.xlu1 %787 }
 0x252   : > { %v849_v14 = vsub.f32 %v1392_v23, %v833_v10  ;;  %v802_v21 = vmul.f32 0.6931472, %v1187_v13  ;;  %1194 = vlog2.f32 %v788_v33 }
 0x253   : > { %864 = vst [vmem:[%s1538_s8 + $0x58] sm:$0xff] %v848_v19  ;;  %v826_v16 = vadd.f32 %v800_v4, %v1474_v30 }
 0x254   : > { %v1189_v17 = vpop.eup %1188  ;;  %865 = vst [vmem:[%s1538_s8 + $0x60] sm:$0xff] %v849_v14  ;;  %v827_v18 = vadd.f32 %v802_v21, %v1486_v42 }
 0x255   : > { %v1191_v31 = vpop.eup %1190  ;;  %v842_v7 = vsub.f32 %v1395_v25, %v826_v16  ;;  %v816_v20 = vmul.f32 0.6931472, %v1189_v17 }
 0x256   : > { %v843_v56 = vsub.f32 %v1413_v43, %v827_v18  ;;  %v818_v23 = vmul.f32 0.6931472, %v1191_v31 }
 0x257   : > { %858 = vst [vmem:[%s1538_s8 + $0x28] sm:$0xff] %v842_v7  ;;  %v834_v22 = vadd.f32 %v816_v20, %v1484_v41 }
 0x258   : > { %v1193_v24 = vpop.eup %1192  ;;  %859 = vst [vmem:[%s1538_s8 + $0x30] sm:$0xff] %v843_v56  ;;  %v835_v30 = vadd.f32 %v818_v23, %v1498_v62 }
 0x259   : > { %v850_v26 = vsub.f32 %v1401_v27, %v834_v22  ;;  %v804_v42 = vmul.f32 0.6931472, %v1193_v24 }
 0x25a   : > { %v851_v28 = vsub.f32 %v1416_v47, %v835_v30 }
 0x25b   : > { %866 = vst [vmem:[%s1538_s8 + $0x68] sm:$0xff] %v850_v26  ;;  %v828_v25 = vadd.f32 %v804_v42, %v1496_v61 }
 0x25c   : > { %v1195_v29 = vpop.eup %1194  ;;  %867 = vst [vmem:[%s1538_s8 + $0x70] sm:$0xff] %v851_v28 }
 0x25d   : > { %v844_v43 = vsub.f32 %v1419_v50, %v828_v25  ;;  %v820_v32 = vmul.f32 0.6931472, %v1195_v29 }
 0x25f   : > { %860 = vst [vmem:[%s1538_s8 + $0x38] sm:$0xff] %v844_v43  ;;  %v836_v41 = vadd.f32 %v820_v32, %v1508_v15 }
 0x261   : > { %v852_v45 = vsub.f32 %v1425_v52, %v836_v41 }
 0x263   : > { %868 = vst [vmem:[%s1538_s8 + $0x78] sm:$0xff] %v852_v45 }
 0x264 PF: > { %s13_s14 = sadd.s32 1, %s1218_s14   ;;  %s1600_s12 = smov %s1214_s13 }
 0x265   : > { %p10_p5 = scmp.ge.s32.totalorder %s13_s14, 4   ;;  %s1601_s13 = smov %s1603_s15 }
 0x267   :  { %12 = sbr.rel (!%p10_p5) target bundleno = 2 (0x2), region = 71 }

// kernel: gcn_forward.4
= control target key start
LH: loop header
LB: loop body
LE: loop exit
PB: predicated region body
PF: predicated region fallthrough
CT: control target
= control target key end

     0   :  { %s1373_s15 = smov 0   ;;  %s1375_s16 = smov 0   ;;  %s1521_s0 = inlined_call_operand.vmem [shape: bf16[256,256], index: 0, kind: input, shape index: {}]   ;;  %s1522_s1 = inlined_call_operand.vmem [shape: bf16[256,128], index: 1, kind: input, shape index: {}]   ;;  %s1523_s2 = inlined_call_operand.vmem [shape: f32[1,128], index: 2, kind: input, shape index: {}]   ;;  %s1524_s3 = inlined_call_operand.vmem [shape: bf16[128,128], index: 3, kind: input, shape index: {}]   ;;  %s1525_s4 = inlined_call_operand.vmem [shape: bf16[256,128], index: 4, kind: output, shape index: {}]  }
   0x1   :  { %s1377_s17 = smov 0  }
   0x2 LB: > { %s26_s18 = sadd.s32 1, %s1342_s16  ;;  %p1011_p0 = scmp.ge.s32.totalorder %s1346_s17, 1  ;;  %s1346_s17 = sphi %s1377_s17, %s14_s17   ;;  %s1342_s16 = sphi %s1375_s16, %s1527_s16   ;;  %s1338_s15 = sphi %s1373_s15, %s1526_s15  }
   0x3   : > { %p28_p1 = scmp.ge.s32.totalorder %s26_s18, 2  ;;  %p183_p2 = scmp.lt.s32.totalorder %s1346_s17, 3 }
   0x5   : > { %s1529_s18 = smov (%p28_p1, %s26_s18), 0  ;;  %p184_p3 = pnand %p1011_p0, %p183_p2 }
   0x6   : > { %v1276_v0 = vld [vmem:[%s1522_s1 + $0x40] sm:$0xff] (!%p184_p3)   ;;  %s1012_s21 = sshll.u32 (!%p184_p3), %s1338_s15, 4  ;;  %v1278_v2 = vld [vmem:[%s1522_s1 + $0x48] sm:$0xff] (!%p184_p3)   ;;  %v1280_v4 = vld [vmem:[%s1522_s1 + $0x50] sm:$0xff] (!%p184_p3)  }
   0x7   : > { %187 = sbr.rel (%p184_p3) target bundleno = 536 (0x218), region = 36  ;;  %v1277_v1 = vld [vmem:[%s1522_s1] sm:$0xff] (!%p184_p3)   ;;  %1140 = vmatprep.subr.bf16.mxu0 (!%p184_p3), %v1276_v0  ;;  %v1279_v3 = vld [vmem:[%s1522_s1 + $0x8] sm:$0xff] (!%p184_p3)   ;;  %p216_p4 = scmp.lt.s32.totalorder (!%p184_p3), %s1012_s21, 31  ;;  %v1281_v5 = vld [vmem:[%s1522_s1 + $0x10] sm:$0xff] (!%p184_p3)  }
   0x8   : > { %1141 = vmatpush3.bf16.msra.mxu0 (!%p184_p3), %v1277_v1  ;;  %v1282_v6 = vld [vmem:[%s1522_s1 + $0x58] sm:$0xff] (!%p184_p3)   ;;  %v1284_v8 = vld [vmem:[%s1522_s1 + $0x60] sm:$0xff] (!%p184_p3)   ;;  %v1286_v10 = vld [vmem:[%s1522_s1 + $0x68] sm:$0xff] (!%p184_p3)  }
   0x9   : > { %1142 = vmatprep.subr.bf16.mxu0 (!%p184_p3), %v1278_v2  ;;  %v1283_v7 = vld [vmem:[%s1522_s1 + $0x18] sm:$0xff] (!%p184_p3)   ;;  %v1285_v9 = vld [vmem:[%s1522_s1 + $0x20] sm:$0xff] (!%p184_p3)   ;;  %v1287_v12 = vld [vmem:[%s1522_s1 + $0x28] sm:$0xff] (!%p184_p3)  }
   0xa   : > { %v1288_v13 = vld [vmem:[%s1522_s1 + $0x70] sm:$0xff] (!%p184_p3)   ;;  %v1290_v15 = vld [vmem:[%s1522_s1 + $0x78] sm:$0xff] (!%p184_p3)   ;;  %v1316_v17 = vld [vmem:[%s1524_s3] sm:$0xff] (!%p184_p3)  }
   0xb   : > { %v1289_v14 = vld [vmem:[%s1522_s1 + $0x30] sm:$0xff] (!%p184_p3)   ;;  %v1291_v16 = vld [vmem:[%s1522_s1 + $0x38] sm:$0xff] (!%p184_p3)   ;;  %v1317_v19 = vld [vmem:[%s1524_s3 + $0x8] sm:$0xff] (!%p184_p3)   ;;  %1220 = vmatprep.subr.bf16.mxu1 (!%p184_p3), %v1316_v17 }
   0xc   : > { %1143 = vmatpush3.bf16.msra.mxu0 (!%p184_p3), %v1279_v3  ;;  %v1318_v21 = vld [vmem:[%s1524_s3 + $0x10] sm:$0xff] (!%p184_p3)   ;;  %1221 = vmatpush3.bf16.msra.mxu1 (!%p184_p3), %v1316_v17  ;;  %v1319_v35 = vld [vmem:[%s1524_s3 + $0x18] sm:$0xff] (!%p184_p3)   ;;  %v1320_v36 = vld [vmem:[%s1524_s3 + $0x20] sm:$0xff] (!%p184_p3)  }
   0xd   : > { %1144 = vmatprep.subr.bf16.mxu0 (!%p184_p3), %v1280_v4  ;;  %1222 = vmatprep.subr.bf16.mxu1 (!%p184_p3), %v1317_v19  ;;  %v1321_v37 = vld [vmem:[%s1524_s3 + $0x28] sm:$0xff] (!%p184_p3)   ;;  %v1322_v38 = vld [vmem:[%s1524_s3 + $0x30] sm:$0xff] (!%p184_p3)   ;;  %v1323_v39 = vld [vmem:[%s1524_s3 + $0x38] sm:$0xff] (!%p184_p3)  }
   0xe   : > { %s1531_s21 = smov (!%p216_p4, %s1012_s21), 31  ;;  %v1490_v42 = vld [vmem:[%s1523_s2] ss:$0 sm:$0xff] }
   0xf   : > { %s1076_s10 = sshll.u32 %s1531_s21, 3  ;;  %s1016_s30 = sshll.u32 %s1531_s21, 2 }
  0x10   : > { %1145 = vmatpush3.bf16.msra.mxu0 %v1281_v5  ;;  %s1424_s15 = scalar_lea.vmem %s1521_s0, %s1076_s10  ;;  %1223 = vmatpush3.bf16.msra.mxu1 %v1317_v19  ;;  %s230_s7 = scalar_lea.vmem %s1525_s4, %s1016_s30 }
  0x11   : > { %1146 = vmatprep.subr.bf16.mxu0 %v1282_v6  ;;  %v1294_v11 = vld [vmem:[%s1424_s15 + $0x4] ss:$8 sps:$4 sm:$0xff]   ;;  %v1292_v18 = vld [vmem:[%s1424_s15] ss:$8 sps:$4 sm:$0xff]   ;;  %v1295_v20 = vld [vmem:[%s1424_s15 + $0x14] ss:$8 sps:$4 sm:$0xff]   ;;  %1224 = vmatprep.subr.bf16.mxu1 %v1318_v21 }
  0x12   : > { %530 = vmatprep.mubr.bf16.mxu0 %v1294_v11  ;;  %v1297_v22 = vld [vmem:[%s1424_s15 + $0x10] ss:$8 sps:$4 sm:$0xff]   ;;  %v1298_v23 = vld [vmem:[%s1424_s15 + $0x24] ss:$8 sps:$4 sm:$0xff]   ;;  %v1300_v24 = vld [vmem:[%s1424_s15 + $0x20] ss:$8 sps:$4 sm:$0xff]  }
  0x13   : > { %v1301_v25 = vld [vmem:[%s1424_s15 + $0x34] ss:$8 sps:$4 sm:$0xff]   ;;  %v1303_v26 = vld [vmem:[%s1424_s15 + $0x30] ss:$8 sps:$4 sm:$0xff]   ;;  %v1304_v27 = vld [vmem:[%s1424_s15 + $0x44] ss:$8 sps:$4 sm:$0xff]  }
  0x14   : > { %1147 = vmatpush3.bf16.msra.mxu0 %v1283_v7  ;;  %1225 = vmatpush3.bf16.msra.mxu1 %v1318_v21  ;;  %v1306_v28 = vld [vmem:[%s1424_s15 + $0x40] ss:$8 sps:$4 sm:$0xff]   ;;  %v1307_v29 = vld [vmem:[%s1424_s15 + $0x54] ss:$8 sps:$4 sm:$0xff]   ;;  %v1309_v30 = vld [vmem:[%s1424_s15 + $0x50] ss:$8 sps:$4 sm:$0xff]  }
  0x15   : > { %1148 = vmatprep.subr.bf16.mxu0 %v1284_v8  ;;  %v1310_v31 = vld [vmem:[%s1424_s15 + $0x64] ss:$8 sps:$4 sm:$0xff]   ;;  %v1312_v32 = vld [vmem:[%s1424_s15 + $0x60] ss:$8 sps:$4 sm:$0xff]   ;;  %v1313_v33 = vld [vmem:[%s1424_s15 + $0x74] ss:$8 sps:$4 sm:$0xff]   ;;  %1226 = vmatprep.subr.bf16.mxu1 %v1319_v35 }
  0x16   : > { %v1315_v34 = vld [vmem:[%s1424_s15 + $0x70] ss:$8 sps:$4 sm:$0xff]  }
  0x18   : > { %1149 = vmatpush3.bf16.msra.mxu0 %v1285_v9  ;;  %1227 = vmatpush3.bf16.msra.mxu1 %v1319_v35 }
  0x19   : > { %1150 = vmatprep.subr.bf16.mxu0 %v1286_v10  ;;  %1228 = vmatprep.subr.bf16.mxu1 %v1320_v36 }
  0x1c   : > { %1151 = vmatpush3.bf16.msra.mxu0 %v1287_v12  ;;  %1229 = vmatpush3.bf16.msra.mxu1 %v1320_v36 }
  0x1d   : > { %1152 = vmatprep.subr.bf16.mxu0 %v1288_v13  ;;  %1230 = vmatprep.subr.bf16.mxu1 %v1321_v37 }
  0x20   : > { %1153 = vmatpush3.bf16.msra.mxu0 %v1289_v14  ;;  %1231 = vmatpush3.bf16.msra.mxu1 %v1321_v37 }
  0x21   : > { %1154 = vmatprep.subr.bf16.mxu0 %v1290_v15  ;;  %1232 = vmatprep.subr.bf16.mxu1 %v1322_v38 }
  0x24   : > { %1155 = vmatpush3.bf16.msra.mxu0 %v1291_v16  ;;  %1233 = vmatpush3.bf16.msra.mxu1 %v1322_v38 }
  0x25   : > { %1234 = vmatprep.subr.bf16.mxu1 %v1323_v39 }
  0x27   : > { %531 = vmatmul.mubr.bf16.vlgmr.msra.gmra.mrb[0].mxu0 %v1292_v18 }
  0x28   : > { %538 = vmatprep.mubr.bf16.mxu0 %v1295_v20  ;;  %1235 = vmatpush3.bf16.msra.mxu1 %v1323_v39 }
  0x2f   : > { %539 = vmatmul.mubr.bf16.gmra.mrb[4].mxu0 %v1297_v22 }
  0x30   : > { %546 = vmatprep.mubr.bf16.mxu0 %v1298_v23 }
  0x37   : > { %547 = vmatmul.mubr.bf16.gmra.mrb[8].mxu0 %v1300_v24 }
  0x38   : > { %554 = vmatprep.mubr.bf16.mxu0 %v1301_v25 }
  0x3f   : > { %555 = vmatmul.mubr.bf16.gmra.mrb[12].mxu0 %v1303_v26 }
  0x40   : > { %562 = vmatprep.mubr.bf16.mxu0 %v1304_v27 }
  0x47   : > { %563 = vmatmul.mubr.bf16.gmra.mrb[16].mxu0 %v1306_v28 }
  0x48   : > { %570 = vmatprep.mubr.bf16.mxu0 %v1307_v29 }
  0x4f   : > { %571 = vmatmul.mubr.bf16.gmra.mrb[20].mxu0 %v1309_v30 }
  0x50   : > { %578 = vmatprep.mubr.bf16.mxu0 %v1310_v31 }
  0x57   : > { %579 = vmatmul.mubr.bf16.gmra.mrb[24].mxu0 %v1312_v32 }
  0x58   : > { %586 = vmatprep.mubr.bf16.mxu0 %v1313_v33 }
  0x5f   : > { %587 = vmatmul.mubr.bf16.gmra.mrb[28].mxu0 %v1315_v34 }
  0xfa   : > { %v1156_v40 = vpop.f32.mrb[0].mxu0 }
  0xfb   : > { %v1157_v41 = vpop.f32.mrb[1].mxu0 }
  0xfc   : > { %v1158_v43 = vadd.f32 %v1157_v41, %v1156_v40  ;;  %v1159_v44 = vpop.f32.mrb[2].mxu0 }
  0xfd   : > { %v1160_v45 = vpop.f32.mrb[3].mxu0 }
  0xfe   : > { %v1161_v46 = vadd.f32 %v1160_v45, %v1159_v44  ;;  %v653_v47 = vadd.f32 %v1158_v43, %v1490_v42 }
 0x100   : > { %v654_v48 = vadd.f32 %v1161_v46, %v1490_v42  ;;  %v669_v50 = vmax.f32 %v653_v47, 0.0 }
 0x102   : > { %v1162_v49 = vpop.f32.mrb[4].mxu0  ;;  %v670_v51 = vmax.f32 %v654_v48, 0.0 }
 0x103   : > { %v1163_v52 = vpop.f32.mrb[5].mxu0 }
 0x104   : > { %v1164_v53 = vadd.f32 %v1163_v52, %v1162_v49  ;;  %v1165_v54 = vpop.f32.mrb[6].mxu0  ;;  %v685_v55 = vpack.c.bf16 %v670_v51, %v669_v50 }
 0x105   : > { %v1166_v56 = vpop.f32.mrb[7].mxu0 }
 0x106   : > { %v655_v57 = vadd.f32 %v1164_v53, %v1490_v42  ;;  %v1167_v58 = vadd.f32 %v1166_v56, %v1165_v54  ;;  %1236 = vmatprep.mubr.bf16.mxu1 %v685_v55 }
 0x108   : > { %v656_v59 = vadd.f32 %v1167_v58, %v1490_v42  ;;  %v671_v60 = vmax.f32 %v655_v57, 0.0 }
 0x10a   : > { %v672_v61 = vmax.f32 %v656_v59, 0.0  ;;  %v1168_v62 = vpop.f32.mrb[8].mxu0 }
 0x10b   : > { %v1169_v63 = vpop.f32.mrb[9].mxu0 }
 0x10c   : > { %v1170_v0 = vadd.f32 %v1169_v63, %v1168_v62  ;;  %v1171_v1 = vpop.f32.mrb[10].mxu0  ;;  %v686_v2 = vpack.c.bf16 %v672_v61, %v671_v60 }
 0x10d   : > { %v1172_v3 = vpop.f32.mrb[11].mxu0 }
 0x10e   : > { %v657_v4 = vadd.f32 %v1170_v0, %v1490_v42  ;;  %v1173_v5 = vadd.f32 %v1172_v3, %v1171_v1  ;;  %1237 = vmatmul.mubr.bf16.vlgmr.msra.gmra.mrb[0].mxu1 %v686_v2 }
 0x110   : > { %v658_v6 = vadd.f32 %v1173_v5, %v1490_v42  ;;  %v673_v7 = vmax.f32 %v657_v4, 0.0 }
 0x112   : > { %v674_v8 = vmax.f32 %v658_v6, 0.0  ;;  %v1174_v9 = vpop.f32.mrb[12].mxu0 }
 0x113   : > { %v1175_v10 = vpop.f32.mrb[13].mxu0 }
 0x114   : > { %v1176_v11 = vadd.f32 %v1175_v10, %v1174_v9  ;;  %v1177_v12 = vpop.f32.mrb[14].mxu0  ;;  %v687_v13 = vpack.c.bf16 %v674_v8, %v673_v7 }
 0x115   : > { %v1178_v14 = vpop.f32.mrb[15].mxu0 }
 0x116   : > { %v659_v15 = vadd.f32 %v1176_v11, %v1490_v42  ;;  %v1179_v16 = vadd.f32 %v1178_v14, %v1177_v12  ;;  %1240 = vmatprep.mubr.bf16.mxu1 %v687_v13 }
 0x118   : > { %v660_v17 = vadd.f32 %v1179_v16, %v1490_v42  ;;  %v675_v18 = vmax.f32 %v659_v15, 0.0 }
 0x11a   : > { %v676_v19 = vmax.f32 %v660_v17, 0.0  ;;  %v1180_v20 = vpop.f32.mrb[16].mxu0 }
 0x11b   : > { %v1181_v21 = vpop.f32.mrb[17].mxu0 }
 0x11c   : > { %v1182_v22 = vadd.f32 %v1181_v21, %v1180_v20  ;;  %v1183_v23 = vpop.f32.mrb[18].mxu0  ;;  %v688_v24 = vpack.c.bf16 %v676_v19, %v675_v18 }
 0x11d   : > { %v1184_v25 = vpop.f32.mrb[19].mxu0 }
 0x11e   : > { %v661_v26 = vadd.f32 %v1182_v22, %v1490_v42  ;;  %v1185_v27 = vadd.f32 %v1184_v25, %v1183_v23  ;;  %1241 = vmatmul.mubr.bf16.gmra.mrb[4].mxu1 %v688_v24 }
 0x120   : > { %v662_v28 = vadd.f32 %v1185_v27, %v1490_v42  ;;  %v677_v29 = vmax.f32 %v661_v26, 0.0 }
 0x122   : > { %v678_v30 = vmax.f32 %v662_v28, 0.0  ;;  %v1186_v31 = vpop.f32.mrb[20].mxu0 }
 0x123   : > { %v1187_v32 = vpop.f32.mrb[21].mxu0 }
 0x124   : > { %v1188_v33 = vadd.f32 %v1187_v32, %v1186_v31  ;;  %v1189_v34 = vpop.f32.mrb[22].mxu0  ;;  %v689_v35 = vpack.c.bf16 %v678_v30, %v677_v29 }
 0x125   : > { %v1190_v36 = vpop.f32.mrb[23].mxu0 }
 0x126   : > { %v663_v37 = vadd.f32 %v1188_v33, %v1490_v42  ;;  %v1191_v38 = vadd.f32 %v1190_v36, %v1189_v34  ;;  %1244 = vmatprep.mubr.bf16.mxu1 %v689_v35 }
 0x128   : > { %v664_v39 = vadd.f32 %v1191_v38, %v1490_v42  ;;  %v679_v40 = vmax.f32 %v663_v37, 0.0 }
 0x12a   : > { %v680_v41 = vmax.f32 %v664_v39, 0.0  ;;  %v1192_v43 = vpop.f32.mrb[24].mxu0 }
 0x12b   : > { %v1193_v44 = vpop.f32.mrb[25].mxu0 }
 0x12c   : > { %v1194_v45 = vadd.f32 %v1193_v44, %v1192_v43  ;;  %v1195_v46 = vpop.f32.mrb[26].mxu0  ;;  %v690_v47 = vpack.c.bf16 %v680_v41, %v679_v40 }
 0x12d   : > { %v1196_v48 = vpop.f32.mrb[27].mxu0 }
 0x12e   : > { %v665_v49 = vadd.f32 %v1194_v45, %v1490_v42  ;;  %v1197_v50 = vadd.f32 %v1196_v48, %v1195_v46  ;;  %1245 = vmatmul.mubr.bf16.gmra.mrb[8].mxu1 %v690_v47 }
 0x130   : > { %v666_v51 = vadd.f32 %v1197_v50, %v1490_v42  ;;  %v681_v52 = vmax.f32 %v665_v49, 0.0 }
 0x132   : > { %v682_v53 = vmax.f32 %v666_v51, 0.0  ;;  %v1198_v54 = vpop.f32.mrb[28].mxu0 }
 0x133   : > { %v1199_v55 = vpop.f32.mrb[29].mxu0 }
 0x134   : > { %v1200_v56 = vadd.f32 %v1199_v55, %v1198_v54  ;;  %v1201_v57 = vpop.f32.mrb[30].mxu0  ;;  %v691_v58 = vpack.c.bf16 %v682_v53, %v681_v52 }
 0x135   : > { %v1202_v59 = vpop.f32.mrb[31].mxu0 }
 0x136   : > { %v667_v60 = vadd.f32 %v1200_v56, %v1490_v42  ;;  %v1203_v61 = vadd.f32 %v1202_v59, %v1201_v57  ;;  %1248 = vmatprep.mubr.bf16.mxu1 %v691_v58 }
 0x138   : > { %v668_v62 = vadd.f32 %v1203_v61, %v1490_v42  ;;  %v683_v63 = vmax.f32 %v667_v60, 0.0 }
 0x13a   : > { %v684_v0 = vmax.f32 %v668_v62, 0.0 }
 0x13c   : > { %v692_v1 = vpack.c.bf16 %v684_v0, %v683_v63 }
 0x13e   : > { %1249 = vmatmul.mubr.bf16.gmra.mrb[12].mxu1 %v692_v1 }
 0x1e1   : > { %v1238_v2 = vpop.f32.mrb[0].mxu1 }
 0x1e2   : > { %v791_v3 = vpop.f32.mrb[1].mxu1 }
 0x1e3   : > { %v1239_v4 = vpop.f32.mrb[2].mxu1 }
 0x1e4   : > { %v1101_v5 = vpack.c.bf16 %v1239_v4, %v1238_v2  ;;  %v794_v6 = vpop.f32.mrb[3].mxu1 }
 0x1e5   : > { %v1096_v7 = vpack.c.bf16 %v794_v6, %v791_v3 }
 0x1e6   : > { %1133 = vst [vmem:[%s230_s7 + $0x8] sm:$0xff] %v1101_v5  }
 0x1e7   : > { %1097 = vst [vmem:[%s230_s7] sm:$0xff] %v1096_v7  }
 0x1f1   : > { %v1242_v8 = vpop.f32.mrb[4].mxu1 }
 0x1f2   : > { %v807_v9 = vpop.f32.mrb[5].mxu1 }
 0x1f3   : > { %v1243_v42 = vpop.f32.mrb[6].mxu1 }
 0x1f4   : > { %v1111_v10 = vpack.c.bf16 %v1243_v42, %v1242_v8  ;;  %v810_v11 = vpop.f32.mrb[7].mxu1 }
 0x1f5   : > { %v1106_v12 = vpack.c.bf16 %v810_v11, %v807_v9 }
 0x1f6   : > { %1135 = vst [vmem:[%s230_s7 + $0x18] sm:$0xff] %v1111_v10  }
 0x1f7   : > { %1134 = vst [vmem:[%s230_s7 + $0x10] sm:$0xff] %v1106_v12  }
 0x201   : > { %v1246_v13 = vpop.f32.mrb[8].mxu1 }
 0x202   : > { %v823_v14 = vpop.f32.mrb[9].mxu1 }
 0x203   : > { %v1247_v15 = vpop.f32.mrb[10].mxu1 }
 0x204   : > { %v1121_v16 = vpack.c.bf16 %v1247_v15, %v1246_v13  ;;  %v826_v17 = vpop.f32.mrb[11].mxu1 }
 0x205   : > { %v1116_v18 = vpack.c.bf16 %v826_v17, %v823_v14 }
 0x206   : > { %1137 = vst [vmem:[%s230_s7 + $0x28] sm:$0xff] %v1121_v16  }
 0x207   : > { %1136 = vst [vmem:[%s230_s7 + $0x20] sm:$0xff] %v1116_v18  }
 0x211   : > { %v1250_v19 = vpop.f32.mrb[12].mxu1 }
 0x212   : > { %v839_v20 = vpop.f32.mrb[13].mxu1 }
 0x213   : > { %v1251_v21 = vpop.f32.mrb[14].mxu1 }
 0x214   : > { %v1131_v22 = vpack.c.bf16 %v1251_v21, %v1250_v19  ;;  %v842_v23 = vpop.f32.mrb[15].mxu1 }
 0x215   : > { %v1126_v24 = vpack.c.bf16 %v842_v23, %v839_v20 }
 0x216   : > { %1139 = vst [vmem:[%s230_s7 + $0x38] sm:$0xff] %v1131_v22  }
 0x217   : > { %1138 = vst [vmem:[%s230_s7 + $0x30] sm:$0xff] %v1126_v24  }
 0x218 PF: > { %s14_s17 = sadd.s32 1, %s1346_s17   ;;  %s1526_s15 = smov %s1342_s16 }
 0x219   : > { %p11_p5 = scmp.ge.s32.totalorder %s14_s17, 4   ;;  %s1527_s16 = smov %s1529_s18 }
 0x21b   :  { %13 = sbr.rel (!%p11_p5) target bundleno = 2 (0x2), region = 75 }

</bundles_post_ra>
